<compile_context>
chip_gen: v6e
topology: v6e:2x2x1
jax: 0.10.0
libtpu: 0.0.40
codegen_flags: <defaults>
</compile_context>

<pallas_src>
import jax
import jax.numpy as jnp
from jax.experimental import pallas as pl
from jax.experimental.pallas import tpu as pltpu

# Phase tables for ConvTranspose2d(kernel=4, stride=2, padding=1): output index
# 2q+r reads zero-padded input offsets q+_OFF[r][t] with kernel index
# _KSEL[r][t] (tap t in {0,1}); identical tables for rows and columns.
_OFF = ((1, 0), (2, 1))
_KSEL = ((1, 3), (0, 2))


def _round_up(v, m):
    return (v + m - 1) // m * m


def _eq_deconv_k4s2p1_kernel(x_ref, w_ref, b_ref, o_ref):
    """One (sample, H-tile) step of ConvTranspose2d(k=4, s=2, p=1).

    x_ref: (tH+2, W+2, Cin_p)     zero-padded NHWC input tile (2-row halo)
    w_ref: (2, 6*Cin_p, 2*Cout_p) per-rh fused (row-tap x col-offset) ->
                                  (width-parity x Cout) matrices, eq-LR scale
                                  folded in, zero blocks for unused col offsets
    b_ref: (1, 2*Cout_p)          bias duplicated for both width parities (f32)
    o_ref: (tH, 2, W, 2*Cout_p)   packed output:
                                  o[q, rh, u, rw*Cout_p + c] == y[2q+rh, 2u+rw, c]
    """
    tHp, Wp, cin_p = x_ref.shape
    tH, W = tHp - 2, Wp - 2
    two_cout_p = o_ref.shape[-1]

    b = b_ref[...]                                    # loaded once, hoisted

    for rh in range(2):
        # 6 shifted windows (2 row taps x 3 col offsets) concatenated along
        # the channel axis -> one big-K GEMM operand.  Slices are taken
        # straight off the ref (no whole-block load).
        parts = []
        for th in range(2):
            oh = _OFF[rh][th]
            for ow in range(3):
                parts.append(x_ref[oh:oh + tH, ow:ow + W, :])
        # NOTE: the reshape is a free relabel when W % 8 == 0 (true for
        # typical GAN feature maps); otherwise it is a repack copy (perf only).
        xs = jnp.concatenate(parts, axis=-1).reshape(tH * W, 6 * cin_p)

        # Single MXU GEMM covering both width parities; f32 accumulation.
        acc = jnp.dot(xs, w_ref[rh], preferred_element_type=jnp.float32)
        acc = acc + b                                 # bias for both parities

        # Lane-dense unmasked slab store (2*Cout_p is a multiple of 128).
        o_ref[:, rh, :, :] = acc.reshape(tH, W, two_cout_p).astype(o_ref.dtype)


def _pick_h_tile(H, W, cout_p, out_itemsize, target_bytes=2 * 1024 * 1024):
    """Largest divisor of H whose packed-output tile fits the per-step budget,
    capped at H//2 (for H > 4) so the grid has >= 2 H-steps to pipeline and to
    shard across TensorCores (v7x)."""
    cap = H if H <= 4 else max(1, H // 2)
    best = 1
    for t in range(1, cap + 1):
        if H % t == 0 and t * 2 * W * 2 * cout_p * out_itemsize <= target_bytes:
            best = t
    return best


def equalized_deconv2d(x, weight, bias, scale, *, compute_dtype=jnp.bfloat16):
    """EqualizedDeconv2d.forward for kernel=4, stride=2, padding=1.

    x:      (N, Cin, H, W)      NCHW, PyTorch convention
    weight: (Cin, Cout, 4, 4)   ConvTranspose2d weight (already divided by scale)
    bias:   (Cout,)
    scale:  scalar              equalized-LR scale (module multiplies x by it)
    returns (N, Cout, 2H, 2W)   dtype = x.dtype
    """
    N, Cin, H, W = x.shape
    Cout = weight.shape[1]
    assert weight.shape == (Cin, Cout, 4, 4), weight.shape
    out_dtype = x.dtype

    # Lane-friendly channel padding: 2*Cout_p % 128 == 0 -> unmasked stores.
    cin_p = _round_up(Cin, 8)
    cout_p = _round_up(Cout, 64)

    # ---- weight / bias packing (tiny, once per call) -----------------------
    # Fold equalized-LR scale into the weight: convT(x*s, W) == convT(x, W*s).
    w_sc = weight.astype(jnp.float32) * scale
    w_packed = jnp.zeros((2, 6 * cin_p, 2 * cout_p), jnp.float32)
    for rh in range(2):
        for th in range(2):
            kh = _KSEL[rh][th]
            for rw in range(2):
                for tw in range(2):
                    ow, kw = _OFF[rw][tw], _KSEL[rw][tw]
                    r0 = (th * 3 + ow) * cin_p
                    c0 = rw * cout_p
                    w_packed = w_packed.at[rh, r0:r0 + Cin, c0:c0 + Cout].set(
                        w_sc[:, :, kh, kw])
    w_packed = w_packed.astype(compute_dtype)

    b_packed = jnp.zeros((1, 2 * cout_p), jnp.float32)
    b_packed = b_packed.at[0, :Cout].set(bias.astype(jnp.float32))
    b_packed = b_packed.at[0, cout_p:cout_p + Cout].set(bias.astype(jnp.float32))

    # ---- input layout plumbing (single fused XLA pass) ---------------------
    tH = _pick_h_tile(H, W, cout_p, jnp.dtype(out_dtype).itemsize)
    nH = H // tH
    x_nhwc = jnp.transpose(x, (0, 2, 3, 1)).astype(compute_dtype)
    xp = jnp.pad(x_nhwc, ((0, 0), (1, 1), (1, 1), (0, cin_p - Cin)))
    # Overlapping H-tiles with a 2-row halo: rows h*tH .. h*tH + tH + 1.
    rows = jnp.arange(nH)[:, None] * tH + jnp.arange(tH + 2)[None, :]
    xp_t = xp[:, rows]                       # (N, nH, tH+2, W+2, Cin_p)

    # ---- per-generation VMEM budget hint ------------------------------------
    itm_in = jnp.dtype(compute_dtype).itemsize
    itm_out = jnp.dtype(out_dtype).itemsize
    in_tile_b = (tH + 2) * (W + 2) * cin_p * itm_in
    out_tile_b = tH * 2 * W * 2 * cout_p * itm_out
    w_b = w_packed.size * itm_in + b_packed.size * 4
    vmem_limit = int(min(96 << 20,
                         max(32 << 20,
                             6 * (in_tile_b + out_tile_b) + w_b + (4 << 20))))

    out_packed = pl.pallas_call(
        _eq_deconv_k4s2p1_kernel,
        out_shape=jax.ShapeDtypeStruct((N, H, 2, W, 2 * cout_p), out_dtype),
        grid=(N, nH),
        in_specs=[
            pl.BlockSpec((None, None, tH + 2, W + 2, cin_p),
                         lambda n, h: (n, h, 0, 0, 0)),
            pl.BlockSpec((2, 6 * cin_p, 2 * cout_p), lambda n, h: (0, 0, 0)),
            pl.BlockSpec((1, 2 * cout_p), lambda n, h: (0, 0)),
        ],
        out_specs=pl.BlockSpec((None, tH, 2, W, 2 * cout_p),
                               lambda n, h: (n, h, 0, 0, 0)),
        compiler_params=pltpu.CompilerParams(
            dimension_semantics=("parallel", "parallel"),
            vmem_limit_bytes=vmem_limit),
    )(xp_t, w_packed, b_packed)

    # (N, H, 2, W, 2*Cout_p) -> (N, 2H, 2W, Cout_p): free adjacent-dim merges;
    # slice off the channel padding, then NHWC -> NCHW to match the module.
    out = out_packed.reshape(N, 2 * H, 2 * W, cout_p)[..., :Cout]
    return jnp.transpose(out, (0, 3, 1, 2))


if __name__ == "__main__":
    key = jax.random.PRNGKey(0)
    kx, kw, kb = jax.random.split(key, 3)

    N, Cin, H, W = 2, 4, 16, 16
    Cout, K, S, P = 8, 4, 2, 1        # canonical 2x-upsampling deconv config

    x = jax.random.normal(kx, (N, Cin, H, W), jnp.float32)

    # Mirror EqualizedDeconv2d.__init__: kaiming-style weight, scale = RMS of
    # the weight, weight /= scale.  (Bias is zero-initialized in the module;
    # use nonzero values here so the bias-add path is actually exercised.)
    fan_in = Cout * K * K
    w0 = jax.random.normal(kw, (Cin, Cout, K, K), jnp.float32) * jnp.sqrt(2.0 / fan_in)
    scale = jnp.sqrt(jnp.mean(w0 * w0))
    weight = w0 / scale
    bias = 0.1 * jax.random.normal(kb, (Cout,), jnp.float32)

    y = equalized_deconv2d(x, weight, bias, scale)
    y = jax.block_until_ready(y)

    assert y.shape == (N, Cout, 2 * H, 2 * W), y.shape
    assert y.dtype == x.dtype

    # Reference: ConvTranspose2d(x * scale, weight) + bias via XLA
    # (transposed conv == dilated conv with spatially flipped OIHW weights).
    w_oihw = jnp.transpose(jnp.flip(weight, (2, 3)), (1, 0, 2, 3))
    y_ref = jax.lax.conv_general_dilated(
        x * scale, w_oihw, window_strides=(1, 1),
        padding=[(K - 1 - P, K - 1 - P)] * 2,
        lhs_dilation=(S, S),
        dimension_numbers=("NCHW", "OIHW", "NCHW"),
        precision=jax.lax.Precision.HIGHEST)
    y_ref = y_ref + bias.reshape(1, Cout, 1, 1)

    # Tolerance chosen for bf16 MXU operands with f32 accumulation.
    max_err = float(jnp.max(jnp.abs(y - y_ref)))
    assert jnp.allclose(y, y_ref, rtol=2e-2, atol=2e-2), max_err

    print("KERNEL_OK")
</pallas_src>

<mosaic_0001>
module attributes {stable_mosaic.version = 11 : i64} {
  func.func @_eq_deconv_k4s2p1_kernel(%arg0: i32, %arg1: i32, %arg2: memref<1x1x10x18x8xbf16, #tpu.memory_space<vmem>>, %arg3: memref<2x48x128xbf16, #tpu.memory_space<vmem>>, %arg4: memref<1x128xf32, #tpu.memory_space<vmem>>, %arg5: memref<1x8x2x16x128xf32, #tpu.memory_space<vmem>>) attributes {dimension_semantics = [#tpu.dimension_semantics<parallel>, #tpu.dimension_semantics<parallel>], iteration_bounds = array<i64: 2, 2>, scalar_prefetch = 0 : i64, scratch_operands = 0 : i64, tpu.core_type = #tpu.core_type<tc>, window_params = [{transform_indices = @transform_0, window_bounds = array<i64: 1, 1, 10, 18, 8>}, {pipeline_mode = #tpu.pipeline_mode<synchronous>, transform_indices = @transform_1, window_bounds = array<i64: 2, 48, 128>}, {pipeline_mode = #tpu.pipeline_mode<synchronous>, transform_indices = @transform_2, window_bounds = array<i64: 1, 128>}, {transform_indices = @transform_3, window_bounds = array<i64: 1, 8, 2, 16, 128>}]} {
    %c0 = arith.constant 0 : index
    %c0_0 = arith.constant 0 : index
    %0 = vector.load %arg4[%c0, %c0_0] : memref<1x128xf32, #tpu.memory_space<vmem>>, vector<1x128xf32>
    %c0_1 = arith.constant 0 : index
    %c0_2 = arith.constant 0 : index
    %c1 = arith.constant 1 : index
    %c0_3 = arith.constant 0 : index
    %c0_4 = arith.constant 0 : index
    %1 = vector.load %arg2[%c0_1, %c0_2, %c1, %c0_3, %c0_4] : memref<1x1x10x18x8xbf16, #tpu.memory_space<vmem>>, vector<1x1x8x16x8xbf16>
    %2 = vector.shape_cast %1 : vector<1x1x8x16x8xbf16> to vector<8x16x8xbf16>
    %c0_5 = arith.constant 0 : index
    %c0_6 = arith.constant 0 : index
    %c1_7 = arith.constant 1 : index
    %c1_8 = arith.constant 1 : index
    %c0_9 = arith.constant 0 : index
    %3 = vector.load %arg2[%c0_5, %c0_6, %c1_7, %c1_8, %c0_9] : memref<1x1x10x18x8xbf16, #tpu.memory_space<vmem>>, vector<1x1x8x16x8xbf16>
    %4 = vector.shape_cast %3 : vector<1x1x8x16x8xbf16> to vector<8x16x8xbf16>
    %c0_10 = arith.constant 0 : index
    %c0_11 = arith.constant 0 : index
    %c1_12 = arith.constant 1 : index
    %c2 = arith.constant 2 : index
    %c0_13 = arith.constant 0 : index
    %5 = vector.load %arg2[%c0_10, %c0_11, %c1_12, %c2, %c0_13] : memref<1x1x10x18x8xbf16, #tpu.memory_space<vmem>>, vector<1x1x8x16x8xbf16>
    %6 = vector.shape_cast %5 : vector<1x1x8x16x8xbf16> to vector<8x16x8xbf16>
    %c0_14 = arith.constant 0 : index
    %c0_15 = arith.constant 0 : index
    %c0_16 = arith.constant 0 : index
    %c0_17 = arith.constant 0 : index
    %c0_18 = arith.constant 0 : index
    %7 = vector.load %arg2[%c0_14, %c0_15, %c0_16, %c0_17, %c0_18] : memref<1x1x10x18x8xbf16, #tpu.memory_space<vmem>>, vector<1x1x8x16x8xbf16>
    %8 = vector.shape_cast %7 : vector<1x1x8x16x8xbf16> to vector<8x16x8xbf16>
    %c0_19 = arith.constant 0 : index
    %c0_20 = arith.constant 0 : index
    %c0_21 = arith.constant 0 : index
    %c1_22 = arith.constant 1 : index
    %c0_23 = arith.constant 0 : index
    %9 = vector.load %arg2[%c0_19, %c0_20, %c0_21, %c1_22, %c0_23] : memref<1x1x10x18x8xbf16, #tpu.memory_space<vmem>>, vector<1x1x8x16x8xbf16>
    %10 = vector.shape_cast %9 : vector<1x1x8x16x8xbf16> to vector<8x16x8xbf16>
    %c0_24 = arith.constant 0 : index
    %c0_25 = arith.constant 0 : index
    %c0_26 = arith.constant 0 : index
    %c2_27 = arith.constant 2 : index
    %c0_28 = arith.constant 0 : index
    %11 = vector.load %arg2[%c0_24, %c0_25, %c0_26, %c2_27, %c0_28] : memref<1x1x10x18x8xbf16, #tpu.memory_space<vmem>>, vector<1x1x8x16x8xbf16>
    %12 = vector.shape_cast %11 : vector<1x1x8x16x8xbf16> to vector<8x16x8xbf16>
    %13 = tpu.concatenate %2, %4, %6, %8, %10, %12 in 2 : vector<8x16x8xbf16>, vector<8x16x8xbf16>, vector<8x16x8xbf16>, vector<8x16x8xbf16>, vector<8x16x8xbf16>, vector<8x16x8xbf16> -> vector<8x16x48xbf16>
    %14 = vector.shape_cast %13 : vector<8x16x48xbf16> to vector<128x48xbf16>
    %c0_29 = arith.constant 0 : index
    %c0_30 = arith.constant 0 : index
    %c0_31 = arith.constant 0 : index
    %15 = vector.load %arg3[%c0_29, %c0_30, %c0_31] : memref<2x48x128xbf16, #tpu.memory_space<vmem>>, vector<1x48x128xbf16>
    %16 = vector.shape_cast %15 : vector<1x48x128xbf16> to vector<48x128xbf16>
    %cst = arith.constant dense<0.000000e+00> : vector<128x128xf32>
    %17 = tpu.matmul %14, %16, %cst {dimension_numbers = #tpu.dot_dimension_numbers<[1], [0], [0], [1], [0, 0, 1, 1], [], []>} : vector<128x48xbf16>, vector<48x128xbf16>, vector<128x128xf32> -> vector<128x128xf32>
    %18 = vector.broadcast %0 : vector<1x128xf32> to vector<128x128xf32>
    %19 = arith.addf %17, %18 : vector<128x128xf32>
    %20 = vector.shape_cast %19 : vector<128x128xf32> to vector<8x16x128xf32>
    %c0_32 = arith.constant 0 : index
    %c0_33 = arith.constant 0 : index
    %c0_34 = arith.constant 0 : index
    %c0_35 = arith.constant 0 : index
    %c0_36 = arith.constant 0 : index
    %21 = vector.load %arg5[%c0_32, %c0_33, %c0_34, %c0_35, %c0_36] : memref<1x8x2x16x128xf32, #tpu.memory_space<vmem>>, vector<1x8x1x16x128xf32>
    %22 = vector.shape_cast %21 : vector<1x8x1x16x128xf32> to vector<8x16x128xf32>
    %23 = vector.shape_cast %20 : vector<8x16x128xf32> to vector<1x8x1x16x128xf32>
    tpu.vector_store %arg5[%c0_32, %c0_33, %c0_34, %c0_35, %c0_36], %23 {strides = array<i32>} : memref<1x8x2x16x128xf32, #tpu.memory_space<vmem>>, vector<1x8x1x16x128xf32>,
    %c0_37 = arith.constant 0 : index
    %c0_38 = arith.constant 0 : index
    %c2_39 = arith.constant 2 : index
    %c0_40 = arith.constant 0 : index
    %c0_41 = arith.constant 0 : index
    %24 = vector.load %arg2[%c0_37, %c0_38, %c2_39, %c0_40, %c0_41] : memref<1x1x10x18x8xbf16, #tpu.memory_space<vmem>>, vector<1x1x8x16x8xbf16>
    %25 = vector.shape_cast %24 : vector<1x1x8x16x8xbf16> to vector<8x16x8xbf16>
    %c0_42 = arith.constant 0 : index
    %c0_43 = arith.constant 0 : index
    %c2_44 = arith.constant 2 : index
    %c1_45 = arith.constant 1 : index
    %c0_46 = arith.constant 0 : index
    %26 = vector.load %arg2[%c0_42, %c0_43, %c2_44, %c1_45, %c0_46] : memref<1x1x10x18x8xbf16, #tpu.memory_space<vmem>>, vector<1x1x8x16x8xbf16>
    %27 = vector.shape_cast %26 : vector<1x1x8x16x8xbf16> to vector<8x16x8xbf16>
    %c0_47 = arith.constant 0 : index
    %c0_48 = arith.constant 0 : index
    %c2_49 = arith.constant 2 : index
    %c2_50 = arith.constant 2 : index
    %c0_51 = arith.constant 0 : index
    %28 = vector.load %arg2[%c0_47, %c0_48, %c2_49, %c2_50, %c0_51] : memref<1x1x10x18x8xbf16, #tpu.memory_space<vmem>>, vector<1x1x8x16x8xbf16>
    %29 = vector.shape_cast %28 : vector<1x1x8x16x8xbf16> to vector<8x16x8xbf16>
    %c0_52 = arith.constant 0 : index
    %c0_53 = arith.constant 0 : index
    %c1_54 = arith.constant 1 : index
    %c0_55 = arith.constant 0 : index
    %c0_56 = arith.constant 0 : index
    %30 = vector.load %arg2[%c0_52, %c0_53, %c1_54, %c0_55, %c0_56] : memref<1x1x10x18x8xbf16, #tpu.memory_space<vmem>>, vector<1x1x8x16x8xbf16>
    %31 = vector.shape_cast %30 : vector<1x1x8x16x8xbf16> to vector<8x16x8xbf16>
    %c0_57 = arith.constant 0 : index
    %c0_58 = arith.constant 0 : index
    %c1_59 = arith.constant 1 : index
    %c1_60 = arith.constant 1 : index
    %c0_61 = arith.constant 0 : index
    %32 = vector.load %arg2[%c0_57, %c0_58, %c1_59, %c1_60, %c0_61] : memref<1x1x10x18x8xbf16, #tpu.memory_space<vmem>>, vector<1x1x8x16x8xbf16>
    %33 = vector.shape_cast %32 : vector<1x1x8x16x8xbf16> to vector<8x16x8xbf16>
    %c0_62 = arith.constant 0 : index
    %c0_63 = arith.constant 0 : index
    %c1_64 = arith.constant 1 : index
    %c2_65 = arith.constant 2 : index
    %c0_66 = arith.constant 0 : index
    %34 = vector.load %arg2[%c0_62, %c0_63, %c1_64, %c2_65, %c0_66] : memref<1x1x10x18x8xbf16, #tpu.memory_space<vmem>>, vector<1x1x8x16x8xbf16>
    %35 = vector.shape_cast %34 : vector<1x1x8x16x8xbf16> to vector<8x16x8xbf16>
    %36 = tpu.concatenate %25, %27, %29, %31, %33, %35 in 2 : vector<8x16x8xbf16>, vector<8x16x8xbf16>, vector<8x16x8xbf16>, vector<8x16x8xbf16>, vector<8x16x8xbf16>, vector<8x16x8xbf16> -> vector<8x16x48xbf16>
    %37 = vector.shape_cast %36 : vector<8x16x48xbf16> to vector<128x48xbf16>
    %c1_67 = arith.constant 1 : index
    %c0_68 = arith.constant 0 : index
    %c0_69 = arith.constant 0 : index
    %38 = vector.load %arg3[%c1_67, %c0_68, %c0_69] : memref<2x48x128xbf16, #tpu.memory_space<vmem>>, vector<1x48x128xbf16>
    %39 = vector.shape_cast %38 : vector<1x48x128xbf16> to vector<48x128xbf16>
    %cst_70 = arith.constant dense<0.000000e+00> : vector<128x128xf32>
    %40 = tpu.matmul %37, %39, %cst_70 {dimension_numbers = #tpu.dot_dimension_numbers<[1], [0], [0], [1], [0, 0, 1, 1], [], []>} : vector<128x48xbf16>, vector<48x128xbf16>, vector<128x128xf32> -> vector<128x128xf32>
    %41 = vector.broadcast %0 : vector<1x128xf32> to vector<128x128xf32>
    %42 = arith.addf %40, %41 : vector<128x128xf32>
    %43 = vector.shape_cast %42 : vector<128x128xf32> to vector<8x16x128xf32>
    %c0_71 = arith.constant 0 : index
    %c0_72 = arith.constant 0 : index
    %c1_73 = arith.constant 1 : index
    %c0_74 = arith.constant 0 : index
    %c0_75 = arith.constant 0 : index
    %44 = vector.load %arg5[%c0_71, %c0_72, %c1_73, %c0_74, %c0_75] : memref<1x8x2x16x128xf32, #tpu.memory_space<vmem>>, vector<1x8x1x16x128xf32>
    %45 = vector.shape_cast %44 : vector<1x8x1x16x128xf32> to vector<8x16x128xf32>
    %46 = vector.shape_cast %43 : vector<8x16x128xf32> to vector<1x8x1x16x128xf32>
    tpu.vector_store %arg5[%c0_71, %c0_72, %c1_73, %c0_74, %c0_75], %46 {strides = array<i32>} : memref<1x8x2x16x128xf32, #tpu.memory_space<vmem>>, vector<1x8x1x16x128xf32>,
    return
  }
  func.func @transform_0(%arg0: i32, %arg1: i32) -> (i32, i32, i32, i32, i32) {
    %c0_i32 = arith.constant 0 : i32
    %c0_i32_0 = arith.constant 0 : i32
    %c0_i32_1 = arith.constant 0 : i32
    %c0_i32_2 = arith.constant 0 : i32
    return %arg0, %arg1, %c0_i32, %c0_i32_0, %c0_i32_1 : i32, i32, i32, i32, i32
  }
  func.func @transform_1(%arg0: i32, %arg1: i32) -> (i32, i32, i32) {
    %c0_i32 = arith.constant 0 : i32
    %c0_i32_0 = arith.constant 0 : i32
    %c0_i32_1 = arith.constant 0 : i32
    %c0_i32_2 = arith.constant 0 : i32
    return %c0_i32, %c0_i32_0, %c0_i32_1 : i32, i32, i32
  }
  func.func @transform_2(%arg0: i32, %arg1: i32) -> (i32, i32) {
    %c0_i32 = arith.constant 0 : i32
    %c0_i32_0 = arith.constant 0 : i32
    %c0_i32_1 = arith.constant 0 : i32
    return %c0_i32, %c0_i32_0 : i32, i32
  }
  func.func @transform_3(%arg0: i32, %arg1: i32) -> (i32, i32, i32, i32, i32) {
    %c0_i32 = arith.constant 0 : i32
    %c0_i32_0 = arith.constant 0 : i32
    %c0_i32_1 = arith.constant 0 : i32
    %c0_i32_2 = arith.constant 0 : i32
    return %arg0, %arg1, %c0_i32, %c0_i32_0, %c0_i32_1 : i32, i32, i32, i32, i32
  }
}

</mosaic_0001>

<bundles_post_ra>
// kernel: tpu_custom_call.1
= control target key start
LH: loop header
LB: loop body
LE: loop exit
PB: predicated region body
PF: predicated region fallthrough
CT: control target
= control target key end

     0   :  { %8 = vsyncpa [#allocation3], 0  ;;  %s3454_s0 = inlined_call_operand.vmem [shape: bf16[2,2,10,18,8], index: 0, kind: input, shape index: {}]   ;;  %s3455_s1 = inlined_call_operand.vmem [shape: bf16[2,48,128], index: 1, kind: input, shape index: {}]   ;;  %s3456_s2 = inlined_call_operand.vmem [shape: f32[1,128], index: 2, kind: input, shape index: {}]   ;;  %s3457_s3 = inlined_call_operand.hbm [shape: f32[2,16,2,16,128], index: 3, kind: output, shape index: {}]  }
   0x1   :  { %10 = vsyncpa [#allocation3 + $0x1], 0  ;;  %s2526_s12 = smov 0   ;;  %s2528_s13 = smov 0  }
   0x2   :  { %s2530_s14 = smov 0   ;;  %s2532_s15 = smov 0  }
   0x3   :  { %s2534_s16 = smov 0   ;;  %s2536_s17 = smov 0  }
   0x4   :  { %s2538_s18 = smov 0   ;;  %s2540_s19 = smov 0  }
   0x5 LB: > { %s1906_s20 = sadd.s32 4294967295, %s2497_s19   ;;  %s1907_s21 = sadd.s32 4294967294, %s2497_s19   ;;  %s2497_s19 = sphi %s2540_s19, %s16_s19   ;;  %s2493_s18 = sphi %s2538_s18, %s3466_s18   ;;  %s2489_s17 = sphi %s2536_s17, %s3465_s17   ;;  %s2485_s16 = sphi %s2534_s16, %s3464_s16   ;;  %s2481_s15 = sphi %s2532_s15, %s3463_s15   ;;  %s2477_s14 = sphi %s2530_s14, %s3462_s14   ;;  %s2473_s13 = sphi %s2528_s13, %s3461_s13   ;;  %s2469_s12 = sphi %s2526_s12, %s3460_s12  }
   0x6   : > { %s25_s22 = sadd.s32 1, %s2489_s17  ;;  %s28_s23 = sadd.s32 1, %s2493_s18 }
   0x7   : > { %p26_p0 = scmp.ge.s32.totalorder %s25_s22, 2  ;;  %p117_p1 = scmp.ne.s32.totalorder %s2477_s14, %s2473_s13 }
   0x8   : > { %p118_p2 = scmp.eq.s32.totalorder %s1906_s20, 3  ;;  %p123_p5 = scmp.ne.s32.totalorder %s2473_s13, %s2469_s12 }
   0x9   : > { %s3468_s22 = smov (%p26_p0, %s25_s22), 0  ;;  %s3470_s23 = smov (!%p26_p0, %s28_s23), %s2493_s18 }
   0xa   : > { %s103_s24 = ssub.s32 %s2489_s17, %s3468_s22  ;;  %p2577_p3 = por %p118_p2, %p117_p1 }
   0xb   : > { %p30_p4 = scmp.ge.s32.totalorder %s3470_s23, 2  ;;  %p124_p6 = scmp.eq.s32.totalorder %s1907_s21, 3 }
   0xc   : > { %p1910_p7 = scmp.ge.s32.totalorder %s2497_s19, 1  ;;  %p160_p9 = scmp.lt.s32.totalorder %s2497_s19, 5 }
   0xd   : > { %s3472_s23 = smov (%p30_p4, %s3470_s23), 0  ;;  %p2586_p8 = por %p124_p6, %p123_p5 }
   0xe   : > { %s102_s27 = ssub.s32 %s2493_s18, %s3472_s23  ;;  %s107_s28 = sadd.s32 1, %s2477_s14 }
   0xf   : > { %s104_s29 = sor.u32 %s103_s24, %s102_s27  ;;  %p161_p10 = pnand %p1910_p7, %p160_p9 }
  0x10   : > { %p105_p11 = scmp.eq.s32.totalorder %s104_s29, 0  ;;  %p188_p12 = scmp.lt.s32.totalorder (!%p161_p10), %s2485_s16, 1 }
  0x11   : > { %164 = sbr.rel (%p161_p10) target bundleno = 524 (0x20c), region = 32  ;;  %p190_p13 = scmp.lt.s32.totalorder (!%p161_p10), %s2481_s15, 1 }
  0x12   : > { %s2595_s30 = scalar_select %p105_p11, %s2477_s14, %s107_s28  }
  0x13   : > { %s2499_s21 = smov (!%p161_p10), 24   ;;  %s2500_s24 = smov (!%p161_p10), 16  }
  0x14   : > { %s2501_s27 = smov (!%p161_p10), 8   ;;  %s2502_s28 = smov (!%p161_p10), 32  }
  0x16   : > { %s189_s4 = scalar_select %p188_p12, %s2485_s16, 1  ;;  %vm466_vm0 = vcmask 1046528   ;;  %vm329_vm1 = vsmask.f32 7424  ;;  %vm763_vm2 = vcmask 64512   ;;  %vm780_vm3 = vcmask 130048  }
  0x17   : > { %s191_s5 = scalar_select %p190_p13, %s2481_s15, 1  ;;  %vm797_vm4 = vcmask 195584   ;;  %vm814_vm5 = vcmask 261120   ;;  %vm831_vm6 = vcmask 326656   ;;  %vm878_vm7 = vcmask 392192  }
  0x18   : > { %s2225_s6 = smul.u32 60, %s189_s4 }
  0x19   : > { %s2224_s7 = smul.u32 30, %s191_s5  ;;  %s2503_s5 = smov 40  }
  0x1b   : > { %s194_s8 = sadd.s32 %s2225_s6, %s2224_s7 }
  0x1c   : > { %s1912_s9 = sshll.u32 %s194_s8, 2  ;;  %s2157_s8 = sshll.u32 %s2481_s15, 5 }
  0x1d   : > { %s2604_s20 = scalar_lea.vmem %s3454_s0, %s1912_s9  ;;  %s2153_s9 = sshll.u32 %s2485_s16, 6 }
  0x1e   : > { %v233_v0 = vld [vmem:[%s2604_s20] sm:$0xf]  ;;  %v2608_v1 = vld [vmem:[%s2604_s20 + $0x4] sm:$0xf]  ;;  %v1916_v3 = vld [vmem:[%s2604_s20 + $0x1c] sm:$0xf]  ;;  %s1818_s10 = sadd.s32 %s2157_s8, %s2153_s9 }
  0x1f   : > { %v2611_v2 = vcombine.low %v233_v0, %v2608_v1  ;;  %v1938_v4 = vld [vmem:[%s2604_s20 + $0x18] sm:$0xe]  ;;  %v2616_v5 = vld [vmem:[%s2604_s20 + $0x20] ss:$0 sps:$4 sm:$0x11]   ;;  %s2154_s15 = sshll.u32 %s1818_s10, 7 }
  0x20   : > { %v1962_v6 = vcombine.low %v1938_v4, %v1916_v3  ;;  %v1914_v7 = vld [vmem:[%s2604_s20 + $0x10] sm:$0xf]  ;;  %v471_v9 = vrot.slane %v2616_v5, 1  ;;  %v1937_v10 = vld [vmem:[%s2604_s20 + $0xc] sm:$0xe]  ;;  %v350_v57 = vshll.u32 %v2616_v5, 16  ;;  %s3392_s29 = scalar_lea.hbm %s3457_s3, %s2154_s15 }
  0x21   : > { %547 = vrot.lane.b32.xlu1 %v2611_v2, %s2499_s21  ;;  %v1913_v11 = vld [vmem:[%s2604_s20 + $0xc] sm:$0xf]  ;;  %v590_v12 = vshll.u32 %v2611_v2, 16  ;;  %v1915_v13 = vld [vmem:[%s2604_s20 + $0x18] sm:$0xf]  ;;  %v1961_v15 = vcombine.low %v1937_v10, %v1914_v7  ;;  %v588_v25 = vshrl.u32 %v2611_v2, 16 }
  0x22   : > { %v470_v8 = vrot.slane %v1962_v6, 1  ;;  %v2308_v14 = vld [vmem:[%s2604_s20 + $0x14] ss:$0 sps:$4 sm:$0x11]   ;;  %v2628_v17 = vcombine.low %v1913_v11, %v1914_v7  ;;  %v2007_v18 = vld [vmem:[%s2604_s20 + $0x24] sm:$0xf]  ;;  %v2636_v26 = vcombine.low %v1915_v13, %v1916_v3 }
  0x23   : > { %v2008_v19 = vld [vmem:[%s2604_s20 + $0x28] sm:$0xf]  ;;  %v2030_v20 = vld [vmem:[%s2604_s20 + $0x24] sm:$0xe]  ;;  %v467_v21 = vrot.slane %v1961_v15, 1  ;;  %v468_v22 = vrot.slane %v2308_v14, 1 }
  0x24   : > { %v472_v16 = vsel %vm466_vm0, %v470_v8, %v471_v9  ;;  %v2312_v23 = vld [vmem:[%s2604_s20 + $0x2c] ss:$0 sps:$4 sm:$0x11]   ;;  %v2086_v24 = vcombine.low %v2030_v20, %v2008_v19  ;;  %v2005_v27 = vld [vmem:[%s2604_s20 + $0x18] sm:$0xf]  ;;  %v331_v37 = vshrl.u32 %v2628_v17, 16  ;;  %v2649_v40 = vcombine.low %v2007_v18, %v2008_v19 }
  0x25   : > { %493 = vrot.lane.b32.xlu0 %v472_v16, %s2500_s24  ;;  %v2006_v28 = vld [vmem:[%s2604_s20 + $0x1c] sm:$0xf]  ;;  %v469_v29 = vsel %vm466_vm0, %v467_v21, %v468_v22  ;;  %v1277_v31 = vrot.slane %v2312_v23, 1  ;;  %v2029_v32 = vld [vmem:[%s2604_s20 + $0x18] sm:$0xe]  ;;  %v333_v38 = vshll.u32 %v2628_v17, 16 }
  0x26   : > { %v1276_v30 = vrot.slane %v2086_v24, 1  ;;  %v2642_v33 = vcombine.low %v2005_v27, %v2006_v28  ;;  %v2037_v34 = vld [vmem:[%s2604_s20 + $0xc] sm:$0xf]  ;;  %491 = vrot.lane.b32.xlu1 %v469_v29, %s2500_s24  ;;  %v2315_v35 = vld [vmem:[%s2604_s20 + $0x20] ss:$0 sps:$4 sm:$0x11]   ;;  %v2085_v36 = vcombine.low %v2029_v32, %v2006_v28 }
  0x27   : > { %v338_v39 = vshll.u32 %v2308_v14, 16  ;;  %v2653_v42 = vld [vmem:[%s2604_s20 + $0x10] sm:$0xf]  ;;  %v1274_v46 = vrot.slane %v2315_v35, 1  ;;  %v335_v47 = vrot.slane %v333_v38, 1  ;;  %v1145_v51 = vshll.u32 %v2315_v35, 16 }
  0x28   : > { %v1278_v41 = vsel %vm466_vm0, %v1276_v30, %v1277_v31  ;;  %v1138_v43 = vshrl.u32 %v2642_v33, 16  ;;  %v1140_v44 = vshll.u32 %v2642_v33, 16  ;;  %v1273_v45 = vrot.slane %v2085_v36, 1  ;;  %v2661_v53 = vld [vmem:[%s2604_s20 + $0x8] ss:$0 sps:$4 sm:$0x11]  }
  0x29   : > { %1299 = vrot.lane.b32.xlu0 %v1278_v41, %s2500_s24  ;;  %v340_v48 = vrot.slane %v338_v39, 1  ;;  %v2093_v49 = vcombine.low %v2037_v34, %v2653_v42  ;;  %v343_v52 = vshrl.u32 %v2636_v26, 16  ;;  %v336_v55 = vor.u32 %v335_v47, %v331_v37  ;;  %v235_v58 = vld [vmem:[%s2604_s20 + $0xc] sm:$0xf]  ;;  %v2670_v63 = vld [vmem:[%s2604_s20 + $0x10] sm:$0xf] }
  0x2a   : > { %v1142_v50 = vrot.slane %v1140_v44, 1  ;;  %v1275_v54 = vsel %vm466_vm0, %v1273_v45, %v1274_v46  ;;  %v345_v56 = vshll.u32 %v2636_v26, 16  ;;  %v1147_v61 = vrot.slane %v1145_v51, 1  ;;  %v2679_v9 = vld [vmem:[%s2604_s20 + $0x14] ss:$0 sps:$4 sm:$0x11]  }
  0x2b   : > { %1297 = vrot.lane.b32.xlu1 %v1275_v54, %s2500_s24  ;;  %v1396_v59 = vshll.u32 %v2093_v49, 16  ;;  %v1150_v62 = vshrl.u32 %v2649_v40, 16  ;;  %v341_v0 = vsel %vm329_vm1, %v336_v55, %v340_v48  ;;  %v352_v4 = vrot.slane %v350_v57, 1  ;;  %v2039_v15 = vld [vmem:[%s2604_s20 + $0x18] sm:$0xf]  ;;  %v2391_v2 = vld [vmem:[%s3455_s1 + $0x28] sm:$0xff]  }
  0x2c   : > { %v1143_v60 = vor.u32 %v1142_v50, %v1138_v43  ;;  %v347_v3 = vrot.slane %v345_v56, 1  ;;  %v1152_v6 = vshll.u32 %v2649_v40, 16  ;;  %v1157_v5 = vshll.u32 %v2312_v23, 16  ;;  %v2687_v16 = vld [vmem:[%s2604_s20 + $0x1c] sm:$0xf]  ;;  %2202 = vmatprep.subr.bf16.mxu1 %v2391_v2  ;;  %v2393_v32 = vld [vmem:[%s3455_s1 + $0x10] sm:$0xff]  }
  0x2d   : > { %426 = vrot.lane.b32.xlu0 %v341_v0, %s2501_s27  ;;  %v592_v7 = vrot.slane %v590_v12, 1  ;;  %v595_v8 = vshll.u32 %v2661_v53, 16  ;;  %v2683_v14 = vcombine.low %v235_v58, %v2670_v63  ;;  %v1394_v22 = vshrl.u32 %v2093_v49, 16  ;;  %v257_v24 = vld [vmem:[%s2604_s20] sm:$0xe]  ;;  %2203 = vmatpush3.bf16.msra.mxu1 %v2391_v2  ;;  %v2398_v46 = vld [vmem:[%s3455_s1 + $0x8] sm:$0xff]  }
  0x2e   : > { %v1148_v10 = vsel %vm329_vm1, %v1143_v60, %v1147_v61  ;;  %v348_v11 = vor.u32 %v347_v3, %v343_v52  ;;  %v1154_v13 = vrot.slane %v1152_v6, 1  ;;  %v1159_v12 = vrot.slane %v1157_v5, 1  ;;  %v2061_v27 = vld [vmem:[%s2604_s20 + $0xc] sm:$0xe]  ;;  %v2062_v39 = vld [vmem:[%s2604_s20 + $0x18] sm:$0xe]  ;;  %2180 = vmatprep.subr.bf16.mxu0 %v2393_v32 }
  0x2f   : > { %1353 = vrot.lane.b32.xlu1 %v2093_v49, %s2499_s21  ;;  %v593_v18 = vor.u32 %v592_v7, %v588_v25  ;;  %v597_v19 = vrot.slane %v595_v8, 1  ;;  %v1398_v23 = vrot.slane %v1396_v59, 1  ;;  %v1401_v28 = vshll.u32 %v2679_v9, 16  ;;  %v2702_v31 = vld [vmem:[%s2604_s20 + $0x14] ss:$0 sps:$4 sm:$0x11]   ;;  %2181 = vmatpush3.bf16.msra.mxu0 %v2393_v32 }
  0x30   : > { %v353_v20 = vsel %vm329_vm1, %v348_v11, %v352_v4  ;;  %v1155_v21 = vor.u32 %v1154_v13, %v1150_v62  ;;  %v2094_v29 = vcombine.low %v2039_v15, %v2687_v16  ;;  %v602_v30 = vshll.u32 %v2683_v14, 16  ;;  %v2709_v34 = vld [vmem:[%s2604_s20 + $0x20] ss:$0 sps:$4 sm:$0x11]   ;;  %v2009_v45 = vld [vmem:[%s2604_s20 + $0x30] sm:$0xf]  ;;  %2182 = vmatprep.subr.bf16.mxu0 %v2398_v46 }
  0x31   : > { %1233 = vrot.lane.b32.xlu0 %v1148_v10, %s2501_s27  ;;  %v1985_v35 = vcombine.low %v257_v24, %v2608_v1  ;;  %v598_v36 = vsel %vm329_vm1, %v593_v18, %v597_v19  ;;  %v1399_v37 = vor.u32 %v1398_v23, %v1394_v22  ;;  %v1403_v38 = vrot.slane %v1401_v28, 1  ;;  %v2396_v41 = vld [vmem:[%s3455_s1 + $0x20] sm:$0xff]   ;;  %v2721_v1 = vld [vmem:[%s2604_s20 + $0x34] sm:$0xf]  ;;  %v2735_v52 = vld [vmem:[%s2604_s20 + $0x28] sm:$0xf] }
  0x32   : > { %v1160_v25 = vsel %vm329_vm1, %v1155_v21, %v1159_v12  ;;  %v2109_v43 = vcombine.low %v2061_v27, %v2653_v42  ;;  %v1408_v44 = vshll.u32 %v2094_v29, 16  ;;  %v600_v47 = vshrl.u32 %v2683_v14, 16  ;;  %2204 = vmatprep.subr.bf16.mxu1 %v2396_v41  ;;  %v2401_v42 = vld [vmem:[%s3455_s1 + $0x18] sm:$0xff]   ;;  %v1917_v51 = vld [vmem:[%s2604_s20 + $0x24] sm:$0xf] }
  0x33   : > { %428 = vrot.lane.b32.xlu1 %v353_v20, %s2501_s27  ;;  %v604_v48 = vrot.slane %v602_v30, 1  ;;  %v607_v49 = vshll.u32 %v2702_v31, 16  ;;  %v2110_v50 = vcombine.low %v2062_v39, %v2687_v16  ;;  %2205 = vmatpush3.bf16.msra.mxu1 %v2396_v41  ;;  %v258_v54 = vld [vmem:[%s2604_s20 + $0xc] sm:$0xe]  ;;  %v1404_v55 = vsel %vm329_vm1, %v1399_v37, %v1403_v38  ;;  %v1919_v7 = vld [vmem:[%s2604_s20 + $0x30] sm:$0xf] }
  0x34   : > { %v723_v56 = vrot.slane %v1985_v35, 1  ;;  %v724_v57 = vrot.slane %v2661_v53, 1  ;;  %v2741_v58 = vcombine.low %v2009_v45, %v2721_v1  ;;  %2206 = vmatprep.subr.bf16.mxu1 %v2401_v42  ;;  %v1529_v59 = vrot.slane %v2109_v43, 1  ;;  %v2402_v53 = vld [vmem:[%s3455_s1] sm:$0xff]   ;;  %2183 = vmatpush3.bf16.msra.mxu0 %v2398_v46  ;;  %v2757_v8 = vld [vmem:[%s2604_s20 + $0x34] sm:$0xf] }
  0x35   : > { %1235 = vrot.lane.b32.xlu0 %v1160_v25, %s2501_s27  ;;  %v1406_v60 = vshrl.u32 %v2094_v29, 16  ;;  %v1410_v61 = vrot.slane %v1408_v44, 1  ;;  %v1413_v62 = vshll.u32 %v2709_v34, 16  ;;  %v605_v0 = vor.u32 %v604_v48, %v600_v47  ;;  %v2761_v11 = vld [vmem:[%s2604_s20 + $0x38] ss:$0 sps:$4 sm:$0x11]   ;;  %2184 = vmatprep.subr.bf16.mxu0 %v2402_v53 }
  0x36   : > { %v609_v3 = vrot.slane %v607_v49, 1  ;;  %v1530_v4 = vrot.slane %v2679_v9, 1  ;;  %v2751_v6 = vcombine.low %v1917_v51, %v2735_v52  ;;  %v1986_v5 = vcombine.low %v258_v54, %v2670_v63  ;;  %v2330_v63 = vld [vmem:[%s2604_s20 + $0x2c] ss:$0 sps:$4 sm:$0x11]  }
  0x37   : > { %683 = vrot.lane.b32.xlu1 %v598_v36, %s2502_s28  ;;  %2207 = vmatpush3.bf16.msra.mxu1 %v2401_v42  ;;  %v725_v10 = vsel %vm466_vm0, %v723_v56, %v724_v57  ;;  %v1164_v13 = vshll.u32 %v2741_v58, 16  ;;  %v1411_v9 = vor.u32 %v1410_v61, %v1406_v60  ;;  %v1532_v16 = vrot.slane %v2110_v50, 1  ;;  %v2011_v21 = vld [vmem:[%s2604_s20 + $0x3c] sm:$0xf]  ;;  %v2776_v22 = vld [vmem:[%s2604_s20 + $0x40] sm:$0xf] }
  0x38   : > { %v610_v15 = vsel %vm329_vm1, %v605_v0, %v609_v3  ;;  %v357_v2 = vshll.u32 %v2751_v6, 16  ;;  %v2769_v12 = vcombine.low %v1919_v7, %v2757_v8  ;;  %2185 = vmatpush3.bf16.msra.mxu0 %v2402_v53  ;;  %v1531_v18 = vsel %vm466_vm0, %v1529_v59, %v1530_v4  ;;  %v1939_v30 = vld [vmem:[%s2604_s20 + $0x24] sm:$0xe]  ;;  %v2785_v32 = vld [vmem:[%s2604_s20 + $0x38] ss:$0 sps:$4 sm:$0x11]  }
  0x39   : > { %549 = vrot.lane.b32.xlu0 %v2683_v14, %s2499_s21  ;;  %v1415_v14 = vrot.slane %v1413_v62, 1  ;;  %v1533_v19 = vrot.slane %v2709_v34, 1  ;;  %v726_v20 = vrot.slane %v1986_v5, 1  ;;  %v727_v23 = vrot.slane %v2702_v31, 1  ;;  %v2031_v46 = vld [vmem:[%s2604_s20 + $0x30] sm:$0xe] }
  0x3a   : > { %v1162_v24 = vshrl.u32 %v2741_v58, 16  ;;  %v1166_v27 = vrot.slane %v1164_v13, 1  ;;  %v1169_v28 = vshll.u32 %v2761_v11, 16  ;;  %v362_v25 = vshll.u32 %v2330_v63, 16  ;;  %v237_v56 = vld [vmem:[%s2604_s20 + $0x18] sm:$0xf] }
  0x3b   : > { %1489 = vrot.lane.b32.xlu1 %v1404_v55, %s2502_s28  ;;  %v355_v34 = vshrl.u32 %v2751_v6, 16  ;;  %v359_v35 = vrot.slane %v357_v2, 1  ;;  %v369_v31 = vshll.u32 %v2769_v12, 16  ;;  %v2790_v36 = vcombine.low %v2011_v21, %v2776_v22  ;;  %v2801_v42 = vld [vmem:[%s2604_s20 + $0x44] ss:$0 sps:$4 sm:$0x11]  }
  0x3c   : > { %v1534_v37 = vsel %vm466_vm0, %v1532_v16, %v1533_v19  ;;  %v1167_v38 = vor.u32 %v1166_v27, %v1162_v24  ;;  %v1171_v39 = vrot.slane %v1169_v28, 1  ;;  %v1963_v41 = vcombine.low %v1939_v30, %v2735_v52  ;;  %v2809_v57 = vld [vmem:[%s2604_s20 + $0x1c] sm:$0xf]  ;;  %v1940_v61 = vld [vmem:[%s2604_s20 + $0x30] sm:$0xe] }
  0x3d   : > { %1355 = vrot.lane.b32.xlu0 %v2094_v29, %s2499_s21  ;;  %v1416_v29 = vsel %vm329_vm1, %v1411_v9, %v1415_v14  ;;  %v728_v43 = vsel %vm466_vm0, %v726_v20, %v727_v23  ;;  %v364_v44 = vrot.slane %v362_v25, 1  ;;  %v374_v45 = vshll.u32 %v2785_v32, 16  ;;  %v2041_v4 = vld [vmem:[%s2604_s20 + $0x24] sm:$0xf]  ;;  %v2820_v5 = vld [vmem:[%s2604_s20 + $0x28] sm:$0xf] }
  0x3e   : > { %v360_v47 = vor.u32 %v359_v35, %v355_v34  ;;  %v367_v48 = vshrl.u32 %v2769_v12, 16  ;;  %v371_v49 = vrot.slane %v369_v31, 1  ;;  %v1176_v50 = vshll.u32 %v2790_v36, 16  ;;  %v2841_v25 = vld [vmem:[%s2604_s20 + $0x28] sm:$0xf] }
  0x3f   : > { %747 = vrot.lane.b32.xlu1 %v725_v10, %s2503_s5  ;;  %v1172_v51 = vsel %vm329_vm1, %v1167_v38, %v1171_v39  ;;  %v473_v52 = vrot.slane %v1963_v41, 1  ;;  %v474_v54 = vrot.slane %v2330_v63, 1  ;;  %v2087_v55 = vcombine.low %v2031_v46, %v2721_v1  ;;  %v2845_v34 = vld [vmem:[%s2604_s20 + $0x2c] ss:$0 sps:$4 sm:$0x11]  }
  0x40   : > { %v376_v59 = vrot.slane %v374_v45, 1  ;;  %v1174_v60 = vshrl.u32 %v2790_v36, 16  ;;  %v365_v62 = vsel %vm329_vm1, %v360_v47, %v364_v44  ;;  %v372_v53 = vor.u32 %v371_v49, %v367_v48  ;;  %v2044_v38 = vld [vmem:[%s2604_s20 + $0x34] sm:$0xf]  ;;  %v259_v39 = vld [vmem:[%s2604_s20 + $0x18] sm:$0xe] }
  0x41   : > { %685 = vrot.lane.b32.xlu0 %v610_v15, %s2502_s28  ;;  %v1178_v0 = vrot.slane %v1176_v50, 1  ;;  %v1181_v3 = vshll.u32 %v2801_v42, 16  ;;  %v1971_v1 = vcombine.low %v237_v56, %v2809_v57  ;;  %v475_v7 = vsel %vm466_vm0, %v473_v52, %v474_v54  ;;  %v2063_v47 = vld [vmem:[%s2604_s20 + $0x24] sm:$0xe]  ;;  %v2064_v52 = vld [vmem:[%s2604_s20 + $0x30] sm:$0xe] }
  0x42   : > { %v1279_v10 = vrot.slane %v2087_v55, 1  ;;  %v1280_v13 = vrot.slane %v2761_v11, 1  ;;  %v1964_v9 = vcombine.low %v1940_v61, %v2757_v8  ;;  %v377_v14 = vsel %vm329_vm1, %v372_v53, %v376_v59  ;;  %v2832_v11 = vld [vmem:[%s2604_s20 + $0x20] ss:$0 sps:$4 sm:$0x11]  }
  0x43   : > { %1553 = vrot.lane.b32.xlu1 %v1531_v18, %s2503_s5  ;;  %v1179_v63 = vor.u32 %v1178_v0, %v1174_v60  ;;  %v1183_v15 = vrot.slane %v1181_v3, 1  ;;  %v2095_v16 = vcombine.low %v2041_v4, %v2820_v5  ;;  %v614_v2 = vshll.u32 %v1971_v1, 16  ;;  %v2032_v18 = vld [vmem:[%s2604_s20 + $0x3c] sm:$0xe]  ;;  %v2013_v61 = vld [vmem:[%s2604_s20 + $0x48] sm:$0xf] }
  0x44   : > { %v1281_v19 = vsel %vm466_vm0, %v1279_v10, %v1280_v13  ;;  %v477_v8 = vrot.slane %v2785_v32, 1  ;;  %v476_v21 = vrot.slane %v1964_v9, 1  ;;  %v2088_v24 = vcombine.low %v2032_v18, %v2776_v22  ;;  %v2859_v49 = vld [vmem:[%s2604_s20 + $0x2c] ss:$0 sps:$4 sm:$0x11]  }
  0x45   : > { %1491 = vrot.lane.b32.xlu0 %v1416_v29, %s2502_s28  ;;  %v1184_v20 = vsel %vm329_vm1, %v1179_v63, %v1183_v15  ;;  %v1420_v23 = vshll.u32 %v2095_v16, 16  ;;  %v612_v27 = vshrl.u32 %v1971_v1, 16  ;;  %v616_v28 = vrot.slane %v614_v2, 1  ;;  %v239_v29 = vld [vmem:[%s2604_s20 + $0x24] sm:$0xf] }
  0x46   : > { %v619_v30 = vshll.u32 %v2832_v11, 16  ;;  %v478_v32 = vsel %vm466_vm0, %v476_v21, %v477_v8  ;;  %v1282_v35 = vrot.slane %v2088_v24, 1  ;;  %v1283_v22 = vrot.slane %v2801_v42, 1  ;;  %v2868_v60 = vld [vmem:[%s2604_s20 + $0x38] ss:$0 sps:$4 sm:$0x11]  }
  0x47   : > { %1555 = vrot.lane.b32.xlu1 %v1534_v37, %s2503_s5  ;;  %v1972_v31 = vcombine.low %v239_v29, %v2841_v25  ;;  %v2043_v37 = vld [vmem:[%s2604_s20 + $0x30] sm:$0xf]  ;;  %v617_v41 = vor.u32 %v616_v28, %v612_v27  ;;  %v1418_v44 = vshrl.u32 %v2095_v16, 16  ;;  %v1422_v45 = vrot.slane %v1420_v23, 1  ;;  %v2878_v4 = vld [vmem:[%s2604_s20 + $0x40] sm:$0xf] }
  0x48   : > { %v1425_v46 = vshll.u32 %v2845_v34, 16  ;;  %v2096_v48 = vcombine.low %v2043_v37, %v2044_v38  ;;  %v1284_v42 = vsel %vm466_vm0, %v1282_v35, %v1283_v22  ;;  %v2111_v54 = vcombine.low %v2063_v47, %v2820_v5  ;;  %v260_v15 = vld [vmem:[%s2604_s20 + $0x24] sm:$0xe]  ;;  %v1923_v21 = vld [vmem:[%s2604_s20 + $0x48] sm:$0xf] }
  0x49   : > { %749 = vrot.lane.b32.xlu0 %v728_v43, %s2503_s5  ;;  %v621_v43 = vrot.slane %v619_v30, 1  ;;  %v626_v50 = vshll.u32 %v1972_v31, 16  ;;  %v1423_v56 = vor.u32 %v1422_v45, %v1418_v44  ;;  %v631_v53 = vshll.u32 %v2859_v49, 16  ;;  %v2899_v23 = vld [vmem:[%s2604_s20 + $0x4c] sm:$0xf] }
  0x4a   : > { %v1427_v59 = vrot.slane %v1425_v46, 1  ;;  %v624_v0 = vshrl.u32 %v1972_v31, 16  ;;  %v2112_v5 = vcombine.low %v2064_v52, %v2044_v38  ;;  %v730_v10 = vrot.slane %v2832_v11, 1  ;;  %v2354_v28 = vld [vmem:[%s2604_s20 + $0x44] ss:$0 sps:$4 sm:$0x11]  }
  0x4b   : > { %1237 = vrot.lane.b32.xlu1 %v1172_v51, %s2501_s27  ;;  %v1987_v51 = vcombine.low %v259_v39, %v2809_v57  ;;  %v622_v55 = vsel %vm329_vm1, %v617_v41, %v621_v43  ;;  %v2874_v57 = vld [vmem:[%s2604_s20 + $0x4c] sm:$0xf]  ;;  %v628_v3 = vrot.slane %v626_v50, 1  ;;  %v1535_v9 = vrot.slane %v2111_v54, 1  ;;  %v2015_v38 = vld [vmem:[%s2604_s20 + $0x54] sm:$0xf] }
  0x4c   : > { %v1428_v13 = vsel %vm329_vm1, %v1423_v56, %v1427_v59  ;;  %v2885_v63 = vcombine.low %v2013_v61, %v2874_v57  ;;  %v1430_v2 = vshrl.u32 %v2096_v48, 16  ;;  %v1437_v8 = vshll.u32 %v2868_v60, 16  ;;  %v2916_v39 = vld [vmem:[%s2604_s20 + $0x58] sm:$0xf]  ;;  %v1941_v46 = vld [vmem:[%s2604_s20 + $0x3c] sm:$0xe] }
  0x4d   : > { %430 = vrot.lane.b32.xlu0 %v365_v62, %s2501_s27  ;;  %v1432_v62 = vshll.u32 %v2096_v48, 16  ;;  %v629_v11 = vor.u32 %v628_v3, %v624_v0  ;;  %v1988_v29 = vcombine.low %v260_v15, %v2841_v25  ;;  %v1538_v30 = vrot.slane %v2112_v5, 1  ;;  %v2924_v50 = vld [vmem:[%s2604_s20 + $0x50] ss:$0 sps:$4 sm:$0x11]  }
  0x4e   : > { %v1188_v27 = vshll.u32 %v2885_v63, 16  ;;  %v2910_v37 = vcombine.low %v1923_v21, %v2899_v23  ;;  %v1186_v41 = vshrl.u32 %v2885_v63, 16  ;;  %v386_v45 = vshll.u32 %v2354_v28, 16  ;;  %v2033_v0 = vld [vmem:[%s2604_s20 + $0x48] sm:$0xe] }
  0x4f   : > { %495 = vrot.lane.b32.xlu1 %v475_v7, %s2500_s24  ;;  %v729_v7 = vrot.slane %v1987_v51, 1  ;;  %v1434_v18 = vrot.slane %v1432_v62, 1  ;;  %v732_v47 = vrot.slane %v1988_v29, 1  ;;  %v733_v52 = vrot.slane %v2859_v49, 1  ;;  %v241_v15 = vld [vmem:[%s2604_s20 + $0x30] sm:$0xf] }
  0x50   : > { %v1190_v43 = vrot.slane %v1188_v27, 1  ;;  %v393_v54 = vshll.u32 %v2910_v37, 16  ;;  %v388_v61 = vrot.slane %v386_v45, 1  ;;  %v1965_v62 = vcombine.low %v1941_v46, %v2878_v4  ;;  %v2939_v3 = vld [vmem:[%s2604_s20 + $0x5c] ss:$0 sps:$4 sm:$0x11]  }
  0x51   : > { %432 = vrot.lane.b32.xlu0 %v377_v14, %s2501_s27  ;;  %v1536_v14 = vrot.slane %v2845_v34, 1  ;;  %v731_v24 = vsel %vm466_vm0, %v729_v7, %v730_v10  ;;  %v1539_v34 = vrot.slane %v2868_v60, 1  ;;  %v1435_v22 = vor.u32 %v1434_v18, %v1430_v2  ;;  %v1942_v27 = vld [vmem:[%s2604_s20 + $0x48] sm:$0xe] }
  0x52   : > { %v1191_v59 = vor.u32 %v1190_v43, %v1186_v41  ;;  %v398_v49 = vshll.u32 %v2924_v50, 16  ;;  %v391_v5 = vshrl.u32 %v2910_v37, 16  ;;  %v395_v7 = vrot.slane %v393_v54, 1  ;;  %v2034_v41 = vld [vmem:[%s2604_s20 + $0x54] sm:$0xe] }
  0x53   : > { %1301 = vrot.lane.b32.xlu1 %v1281_v19, %s2500_s24  ;;  %v1537_v25 = vsel %vm466_vm0, %v1535_v9, %v1536_v14  ;;  %v1540_v56 = vsel %vm466_vm0, %v1538_v30, %v1539_v34  ;;  %v480_v9 = vrot.slane %v2354_v28, 1  ;;  %v2089_v14 = vcombine.low %v2033_v0, %v2874_v57  ;;  %v261_v0 = vld [vmem:[%s2604_s20 + $0x30] sm:$0xe] }
  0x54   : > { %v400_v18 = vrot.slane %v398_v49, 1  ;;  %v1966_v34 = vcombine.low %v1942_v27, %v2899_v23  ;;  %v483_v45 = vrot.slane %v2924_v50, 1  ;;  %v2048_v49 = vld [vmem:[%s2604_s20 + $0x4c] sm:$0xf] }
  0x55   : > { %1239 = vrot.lane.b32.xlu0 %v1184_v20, %s2501_s27  ;;  %v2894_v20 = vld [vmem:[%s2604_s20 + $0x50] ss:$0 sps:$4 sm:$0x11]   ;;  %v1285_v29 = vrot.slane %v2089_v14, 1 }
  0x56   : > { %v1193_v44 = vshll.u32 %v2894_v20, 16  ;;  %v1286_v30 = vrot.slane %v2894_v20, 1  ;;  %v482_v23 = vrot.slane %v1966_v34, 1  ;;  %v2374_v27 = vld [vmem:[%s2604_s20 + $0x50] ss:$0 sps:$4 sm:$0x11]  }
  0x57   : > { %551 = vrot.lane.b32.xlu1 %v1971_v1, %s2499_s21  ;;  %v1921_v1 = vld [vmem:[%s2604_s20 + $0x3c] sm:$0xf] }
  0x58   : > { %v2890_v19 = vcombine.low %v1921_v1, %v2878_v4  ;;  %v1195_v60 = vrot.slane %v1193_v44, 1  ;;  %v734_v1 = vsel %vm466_vm0, %v732_v47, %v733_v52  ;;  %v1287_v20 = vsel %vm466_vm0, %v1285_v29, %v1286_v30  ;;  %v2972_v44 = vld [vmem:[%s2604_s20 + $0x38] ss:$0 sps:$4 sm:$0x11]   ;;  %v1925_v29 = vld [vmem:[%s2604_s20 + $0x54] sm:$0xf] }
  0x59   : > { %497 = vrot.lane.b32.xlu0 %v478_v32, %s2500_s24  ;;  %v2090_v47 = vcombine.low %v2034_v41, %v2916_v39  ;;  %v3014_v30 = vld [vmem:[%s2604_s20 + $0x58] sm:$0xf]  ;;  %v262_v41 = vld [vmem:[%s2604_s20 + $0x3c] sm:$0xe] }
  0x5a   : > { %v381_v32 = vshll.u32 %v2890_v19, 16  ;;  %v1196_v4 = vsel %vm329_vm1, %v1191_v59, %v1195_v60  ;;  %v2985_v59 = vld [vmem:[%s2604_s20 + $0x44] ss:$0 sps:$4 sm:$0x11]  }
  0x5b   : > { %1357 = vrot.lane.b32.xlu1 %v2095_v16, %s2499_s21  ;;  %v633_v16 = vrot.slane %v631_v53, 1  ;;  %v1288_v60 = vrot.slane %v2090_v47, 1 }
  0x5d   : > { %1303 = vrot.lane.b32.xlu0 %v1284_v42, %s2500_s24  ;;  %v634_v35 = vsel %vm329_vm1, %v629_v11, %v633_v16  ;;  %v383_v42 = vrot.slane %v381_v32, 1  ;;  %v2949_v16 = vld [vmem:[%s2604_s20 + $0x34] sm:$0xf]  ;;  %v396_v11 = vor.u32 %v395_v7, %v391_v5  ;;  %v2045_v32 = vld [vmem:[%s2604_s20 + $0x3c] sm:$0xf] }
  0x5e   : > { %v1973_v57 = vcombine.low %v241_v15, %v2949_v16  ;;  %v1989_v14 = vcombine.low %v261_v0, %v2949_v16  ;;  %v2065_v15 = vld [vmem:[%s2604_s20 + $0x3c] sm:$0xe] }
  0x5f   : > { %687 = vrot.lane.b32.xlu1 %v622_v55, %s2502_s28  ;;  %v2930_v55 = vcombine.low %v2015_v38, %v2916_v39  ;;  %v484_v39 = vsel %vm466_vm0, %v482_v23, %v483_v45 }
  0x60   : > { %v638_v38 = vshll.u32 %v1973_v57, 16 }
  0x61   : > { %553 = vrot.lane.b32.xlu0 %v1972_v31, %s2499_s21  ;;  %v1439_v31 = vrot.slane %v1437_v8, 1  ;;  %v1200_v10 = vshll.u32 %v2930_v55, 16  ;;  %v1198_v8 = vshrl.u32 %v2930_v55, 16 }
  0x62   : > { %v640_v52 = vrot.slane %v638_v38, 1 }
  0x63   : > { %1493 = vrot.lane.b32.xlu1 %v1428_v13, %s2502_s28  ;;  %v1440_v51 = vsel %vm329_vm1, %v1435_v22, %v1439_v31  ;;  %v479_v13 = vrot.slane %v1965_v62, 1  ;;  %v1202_v21 = vrot.slane %v1200_v10, 1  ;;  %v401_v22 = vsel %vm329_vm1, %v396_v11, %v400_v18 }
  0x64   : > { %v1449_v10 = vshll.u32 %v2985_v59, 16 }
  0x65   : > { %1359 = vrot.lane.b32.xlu0 %v2096_v48, %s2499_s21  ;;  %v379_v48 = vshrl.u32 %v2890_v19, 16  ;;  %v481_v28 = vsel %vm466_vm0, %v479_v13, %v480_v9  ;;  %v1203_v31 = vor.u32 %v1202_v21, %v1198_v8  ;;  %v2999_v9 = vld [vmem:[%s2604_s20 + $0x44] ss:$0 sps:$4 sm:$0x11]   ;;  %v2017_v21 = vld [vmem:[%s2604_s20 + $0x60] sm:$0xf] }
  0x66   : > { %v1451_v11 = vrot.slane %v1449_v10, 1  ;;  %v655_v16 = vshll.u32 %v2999_v9, 16 }
  0x67   : > { %751 = vrot.lane.b32.xlu1 %v731_v24, %s2503_s5  ;;  %v384_v53 = vor.u32 %v383_v42, %v379_v48  ;;  %v1205_v24 = vshll.u32 %v2939_v3, 16  ;;  %v243_v48 = vld [vmem:[%s2604_s20 + $0x3c] sm:$0xf]  ;;  %v2980_v42 = vld [vmem:[%s2604_s20 + $0x40] sm:$0xf] }
  0x68   : > { %v1974_v50 = vcombine.low %v243_v48, %v2980_v42  ;;  %v1542_v48 = vrot.slane %v2985_v59, 1 }
  0x69   : > { %689 = vrot.lane.b32.xlu0 %v634_v35, %s2502_s28  ;;  %v389_v2 = vsel %vm329_vm1, %v384_v53, %v388_v61  ;;  %v2964_v35 = vld [vmem:[%s2604_s20 + $0x40] sm:$0xf]  ;;  %v1289_v61 = vrot.slane %v2939_v3, 1  ;;  %v2047_v53 = vld [vmem:[%s2604_s20 + $0x48] sm:$0xf] }
  0x6a   : > { %v2097_v43 = vcombine.low %v2045_v32, %v2964_v35  ;;  %v2098_v13 = vcombine.low %v2047_v53, %v2048_v49  ;;  %v648_v8 = vshrl.u32 %v1974_v50, 16  ;;  %v2113_v34 = vcombine.low %v2065_v15, %v2964_v35 }
  0x6b   : > { %1557 = vrot.lane.b32.xlu1 %v1537_v25, %s2503_s5  ;;  %v1207_v25 = vrot.slane %v1205_v24, 1  ;;  %v1290_v3 = vsel %vm466_vm0, %v1288_v60, %v1289_v61  ;;  %v3027_v35 = vcombine.low %v1925_v29, %v3014_v30  ;;  %v3043_v60 = vld [vmem:[%s2604_s20 + $0x5c] ss:$0 sps:$4 sm:$0x11]  }
  0x6c   : > { %v1444_v54 = vshll.u32 %v2097_v43, 16  ;;  %v1442_v5 = vshrl.u32 %v2097_v43, 16  ;;  %v1454_v23 = vshrl.u32 %v2098_v13, 16 }
  0x6d   : > { %1495 = vrot.lane.b32.xlu0 %v1440_v51, %s2502_s28  ;;  %v1208_v46 = vsel %vm329_vm1, %v1203_v31, %v1207_v25  ;;  %v636_v51 = vshrl.u32 %v1973_v57, 16  ;;  %v735_v31 = vrot.slane %v1989_v14, 1  ;;  %v736_v25 = vrot.slane %v2972_v44, 1  ;;  %v1943_v14 = vld [vmem:[%s2604_s20 + $0x54] sm:$0xe] }
  0x6e   : > { %v1446_v7 = vrot.slane %v1444_v54, 1  ;;  %v1990_v54 = vcombine.low %v262_v41, %v2980_v42  ;;  %v405_v59 = vshll.u32 %v3027_v35, 16  ;;  %v403_v15 = vshrl.u32 %v3027_v35, 16  ;;  %v2035_v41 = vld [vmem:[%s2604_s20 + $0x60] sm:$0xe] }
  0x6f   : > { %1559 = vrot.lane.b32.xlu1 %v1540_v56, %s2503_s5  ;;  %v643_v56 = vshll.u32 %v2972_v44, 16  ;;  %v641_v62 = vor.u32 %v640_v52, %v636_v51  ;;  %v1541_v44 = vrot.slane %v2113_v34, 1  ;;  %v1927_v51 = vld [vmem:[%s2604_s20 + $0x60] sm:$0xf]  ;;  %v3033_v52 = vld [vmem:[%s2604_s20 + $0x64] sm:$0xf] }
  0x70   : > { %v1447_v18 = vor.u32 %v1446_v7, %v1442_v5  ;;  %v3048_v42 = vcombine.low %v1927_v51, %v3033_v52  ;;  %v2019_v5 = vld [vmem:[%s2604_s20 + $0x6c] sm:$0xf]  ;;  %v3054_v7 = vld [vmem:[%s2604_s20 + $0x70] sm:$0xf]  ;;  %v738_v10 = vrot.slane %v1990_v54, 1 }
  0x71   : > { %753 = vrot.lane.b32.xlu0 %v734_v1, %s2503_s5  ;;  %v645_v1 = vrot.slane %v643_v56, 1  ;;  %v737_v56 = vsel %vm466_vm0, %v735_v31, %v736_v25 }
  0x72   : > { %v1452_v32 = vsel %vm329_vm1, %v1447_v18, %v1451_v11  ;;  %v410_v18 = vshll.u32 %v3043_v60, 16  ;;  %v3063_v11 = vld [vmem:[%s2604_s20 + $0x68] ss:$0 sps:$4 sm:$0x11]  }
  0x73   : > { %1241 = vrot.lane.b32.xlu1 %v1196_v4, %s2501_s27  ;;  %v650_v4 = vshll.u32 %v1974_v50, 16  ;;  %v422_v25 = vshll.u32 %v3063_v11, 16 }
  0x75   : > { %434 = vrot.lane.b32.xlu0 %v389_v2, %s2501_s27  ;;  %v646_v2 = vsel %vm329_vm1, %v641_v62, %v645_v1  ;;  %v652_v24 = vrot.slane %v650_v4, 1  ;;  %v1545_v1 = vrot.slane %v2374_v27, 1 }
  0x77   : > { %499 = vrot.lane.b32.xlu1 %v481_v28, %s2500_s24  ;;  %v1456_v28 = vshll.u32 %v2098_v13, 16 }
  0x79   : > { %436 = vrot.lane.b32.xlu0 %v401_v22, %s2501_s27  ;;  %v2066_v22 = vld [vmem:[%s2604_s20 + $0x48] sm:$0xe]  ;;  %v1458_v45 = vrot.slane %v1456_v28, 1  ;;  %v3071_v28 = vcombine.low %v2019_v5, %v3054_v7 }
  0x7a   : > { %v2114_v47 = vcombine.low %v2066_v22, %v2048_v49  ;;  %v1543_v49 = vsel %vm466_vm0, %v1541_v44, %v1542_v48  ;;  %v486_v48 = vrot.slane %v3043_v60, 1 }
  0x7b   : > { %1305 = vrot.lane.b32.xlu1 %v1287_v20, %s2500_s24  ;;  %v653_v20 = vor.u32 %v652_v24, %v648_v8  ;;  %v1459_v62 = vor.u32 %v1458_v45, %v1454_v23  ;;  %v739_v24 = vrot.slane %v2999_v9, 1  ;;  %v412_v9 = vrot.slane %v410_v18, 1  ;;  %v3084_v45 = vld [vmem:[%s2604_s20 + $0x74] ss:$0 sps:$4 sm:$0x11]  }
  0x7c   : > { %v1544_v0 = vrot.slane %v2114_v47, 1  ;;  %v1229_v60 = vshll.u32 %v3084_v45, 16 }
  0x7d   : > { %1243 = vrot.lane.b32.xlu0 %v1208_v46, %s2501_s27  ;;  %v1461_v46 = vshll.u32 %v2374_v27, 16  ;;  %v417_v27 = vshll.u32 %v3048_v42, 16 }
  0x7f   : > { %555 = vrot.lane.b32.xlu1 %v1973_v57, %s2499_s21  ;;  %v3009_v57 = vld [vmem:[%s2604_s20 + $0x64] sm:$0xf]  ;;  %v1463_v53 = vrot.slane %v1461_v46, 1  ;;  %v419_v23 = vrot.slane %v417_v27, 1 }
  0x80   : > { %v3022_v38 = vcombine.low %v2017_v21, %v3009_v57  ;;  %v2091_v51 = vcombine.low %v2035_v41, %v3009_v57  ;;  %v1944_v57 = vld [vmem:[%s2604_s20 + $0x60] sm:$0xe] }
  0x81   : > { %501 = vrot.lane.b32.xlu0 %v484_v39, %s2500_s24  ;;  %v1464_v21 = vsel %vm329_vm1, %v1459_v62, %v1463_v53  ;;  %v1222_v53 = vshrl.u32 %v3071_v28, 16  ;;  %v1968_v18 = vcombine.low %v1944_v57, %v3033_v52 }
  0x82   : > { %v1212_v39 = vshll.u32 %v3022_v38, 16  ;;  %v1210_v4 = vshrl.u32 %v3022_v38, 16 }
  0x83   : > { %1361 = vrot.lane.b32.xlu1 %v2097_v43, %s2499_s21  ;;  %v657_v43 = vrot.slane %v655_v16, 1  ;;  %v1546_v16 = vsel %vm466_vm0, %v1544_v0, %v1545_v1  ;;  %v1291_v1 = vrot.slane %v2091_v51, 1 }
  0x85   : > { %1307 = vrot.lane.b32.xlu0 %v1290_v3, %s2500_s24  ;;  %v658_v61 = vsel %vm329_vm1, %v653_v20, %v657_v43  ;;  %v1214_v3 = vrot.slane %v1212_v39, 1  ;;  %v740_v20 = vsel %vm466_vm0, %v738_v10, %v739_v24  ;;  %v415_v43 = vshrl.u32 %v3048_v42, 16  ;;  %v245_v39 = vld [vmem:[%s2604_s20 + $0x48] sm:$0xf]  ;;  %v2036_v24 = vld [vmem:[%s2604_s20 + $0x6c] sm:$0xe] }
  0x86   : > { %v2092_v41 = vcombine.low %v2036_v24, %v3054_v7 }
  0x87   : > { %691 = vrot.lane.b32.xlu1 %v646_v2, %s2502_s28  ;;  %v407_v2 = vrot.slane %v405_v59, 1  ;;  %v1215_v29 = vor.u32 %v1214_v3, %v1210_v4  ;;  %v3097_v59 = vld [vmem:[%s2604_s20 + $0x4c] sm:$0xf]  ;;  %v420_v62 = vor.u32 %v419_v23, %v415_v43  ;;  %v2049_v4 = vld [vmem:[%s2604_s20 + $0x54] sm:$0xf] }
  0x88   : > { %v1975_v10 = vcombine.low %v245_v39, %v3097_v59  ;;  %v3110_v3 = vld [vmem:[%s2604_s20 + $0x58] sm:$0xf]  ;;  %v1294_v7 = vrot.slane %v2092_v41, 1  ;;  %v3147_v39 = vld [vmem:[%s2604_s20 + $0x64] sm:$0xf] }
  0x89   : > { %557 = vrot.lane.b32.xlu0 %v1974_v50, %s2499_s21  ;;  %v3038_v50 = vld [vmem:[%s2604_s20 + $0x68] ss:$0 sps:$4 sm:$0x11]   ;;  %v408_v31 = vor.u32 %v407_v2, %v403_v15  ;;  %v1231_v2 = vrot.slane %v1229_v60, 1  ;;  %v263_v60 = vld [vmem:[%s2604_s20 + $0x48] sm:$0xe] }
  0x8a   : > { %v1292_v5 = vrot.slane %v3038_v50, 1  ;;  %v660_v23 = vshrl.u32 %v1975_v10, 16 }
  0x8b   : > { %1497 = vrot.lane.b32.xlu1 %v1452_v32, %s2502_s28  ;;  %v1967_v32 = vcombine.low %v1943_v14, %v3014_v30  ;;  %v1224_v30 = vshll.u32 %v3071_v28, 16  ;;  %v413_v54 = vsel %vm329_vm1, %v408_v31, %v412_v9  ;;  %v3129_v31 = vld [vmem:[%s2604_s20 + $0x58] sm:$0xf]  ;;  %v488_v9 = vrot.slane %v1968_v18, 1  ;;  %v2067_v18 = vld [vmem:[%s2604_s20 + $0x54] sm:$0xe] }
  0x8c   : > { %v1293_v27 = vsel %vm466_vm0, %v1291_v1, %v1292_v5  ;;  %v2115_v41 = vcombine.low %v2067_v18, %v3110_v3 }
  0x8d   : > { %1363 = vrot.lane.b32.xlu0 %v2098_v13, %s2499_s21  ;;  %v1217_v13 = vshll.u32 %v3038_v50, 16  ;;  %v485_v44 = vrot.slane %v1967_v32, 1  ;;  %v247_v32 = vld [vmem:[%s2604_s20 + $0x54] sm:$0xf] }
  0x8f   : > { %755 = vrot.lane.b32.xlu1 %v737_v56, %s2503_s5  ;;  %v1219_v34 = vrot.slane %v1217_v13, 1  ;;  %v424_v56 = vrot.slane %v422_v25, 1  ;;  %v487_v0 = vsel %vm466_vm0, %v485_v44, %v486_v48  ;;  %v489_v25 = vrot.slane %v3063_v11, 1  ;;  %v3138_v48 = vld [vmem:[%s2604_s20 + $0x5c] ss:$0 sps:$4 sm:$0x11]  }
  0x90   : > { %v1976_v44 = vcombine.low %v247_v32, %v3129_v31  ;;  %v1473_v5 = vshll.u32 %v3138_v48, 16 }
  0x91   : > { %693 = vrot.lane.b32.xlu0 %v658_v61, %s2502_s28  ;;  %v1220_v47 = vsel %vm329_vm1, %v1215_v29, %v1219_v34  ;;  %v425_v14 = vsel %vm329_vm1, %v420_v62, %v424_v56  ;;  %v3122_v29 = vld [vmem:[%s2604_s20 + $0x50] ss:$0 sps:$4 sm:$0x11]   ;;  %v490_v11 = vsel %vm466_vm0, %v488_v9, %v489_v25  ;;  %v2051_v56 = vld [vmem:[%s2604_s20 + $0x60] sm:$0xf] }
  0x92   : > { %v674_v1 = vshll.u32 %v1976_v44, 16  ;;  %v1475_v32 = vrot.slane %v1473_v5, 1  ;;  %v1547_v5 = vrot.slane %v2115_v41, 1 }
  0x93   : > { %v3065_v8 = vpop.permute.xlu1 %547  ;;  %1561 = vrot.lane.b32.xlu1 %v1543_v49, %s2503_s5  ;;  %v1226_v49 = vrot.slane %v1224_v30, 1 }
  0x94   : > { %v676_v9 = vrot.slane %v674_v1, 1 }
  0x95   : > { %1499 = vrot.lane.b32.xlu0 %v1464_v21, %s2502_s28  ;;  %v1227_v15 = vor.u32 %v1226_v49, %v1222_v53  ;;  %v2099_v21 = vcombine.low %v2049_v4, %v3110_v3 }
  0x97   : > { %v3077_v22 = vpop.permute.xlu0 %493  ;;  %1563 = vrot.lane.b32.xlu1 %v1546_v16, %s2503_s5  ;;  %v662_v16 = vshll.u32 %v1975_v10, 16  ;;  %v1232_v52 = vsel %vm329_vm1, %v1227_v15, %v1231_v2  ;;  %v1468_v43 = vshll.u32 %v2099_v21, 16  ;;  %v1466_v53 = vshrl.u32 %v2099_v21, 16 }
  0x98   : > { %v3088_v46 = vpop.permute.xlu1 %491  ;;  %v1991_v2 = vcombine.low %v263_v60, %v3097_v59  ;;  %v264_v60 = vld [vmem:[%s2604_s20 + $0x54] sm:$0xe] }
  0x99   : > { %757 = vrot.lane.b32.xlu0 %v740_v20, %s2503_s5  ;;  %v664_v30 = vrot.slane %v662_v16, 1  ;;  %v1470_v49 = vrot.slane %v1468_v43, 1  ;;  %v3174_v43 = vld [vmem:[%s2604_s20 + $0x68] ss:$0 sps:$4 sm:$0x11]  }
  0x9b   : > { %v3099_v61 = vpop.permute.xlu0 %1299  ;;  %1245 = vrot.lane.b32.xlu1 %v1220_v47, %s2501_s27  ;;  %v667_v47 = vshll.u32 %v3122_v29, 16  ;;  %v665_v57 = vor.u32 %v664_v30, %v660_v23  ;;  %v742_v30 = vrot.slane %v3122_v29, 1 }
  0x9d   : > { %v3112_v13 = vpop.permute.xlu1 %1297  ;;  %438 = vrot.lane.b32.xlu0 %v413_v54, %s2501_s27  ;;  %v1295_v54 = vrot.slane %v3084_v45, 1  ;;  %v2100_v45 = vcombine.low %v2051_v56, %v3147_v39 }
  0x9f   : > { %503 = vrot.lane.b32.xlu1 %v487_v0, %s2500_s24  ;;  %v427_v50 = vpop.permute.xlu0 %426  ;;  %v669_v0 = vrot.slane %v667_v47, 1  ;;  %v1296_v15 = vsel %vm466_vm0, %v1294_v7, %v1295_v54  ;;  %v1480_v59 = vshll.u32 %v2100_v45, 16  ;;  %v1478_v7 = vshrl.u32 %v2100_v45, 16 }
  0xa1   : > { %v3124_v34 = vpop.permute.xlu1 %1353  ;;  %440 = vrot.lane.b32.xlu0 %v425_v14, %s2501_s27  ;;  %v3155_v14 = vld [vmem:[%s2604_s20 + $0x5c] ss:$0 sps:$4 sm:$0x11]   ;;  %v670_v16 = vsel %vm329_vm1, %v665_v57, %v669_v0 }
  0xa3   : > { %1309 = vrot.lane.b32.xlu1 %v1293_v27, %s2500_s24  ;;  %v1234_v20 = vpop.permute.xlu0 %1233  ;;  %v1471_v27 = vor.u32 %v1470_v49, %v1466_v53  ;;  %v1482_v49 = vrot.slane %v1480_v59, 1  ;;  %v745_v59 = vrot.slane %v3155_v14, 1 }
  0xa5   : > { %v3140_v51 = vpop.permute.xlu1 %428  ;;  %1247 = vrot.lane.b32.xlu0 %v1232_v52, %s2501_s27  ;;  %v672_v52 = vshrl.u32 %v1976_v44, 16 }
  0xa7   : > { %559 = vrot.lane.b32.xlu1 %v1975_v10, %s2499_s21  ;;  %v1236_v62 = vpop.permute.xlu0 %1235  ;;  %v765_v10 = vsel %vm763_vm2, %v2628_v17, %v427_v50  ;;  %v679_v50 = vshll.u32 %v3155_v14, 16 }
  0xa8   : > { %v782_v25 = vsel %vm780_vm3, %v765_v10, %v3088_v46  ;;  %v741_v46 = vrot.slane %v1991_v2, 1  ;;  %v1572_v57 = vsel %vm763_vm2, %v2649_v40, %v1236_v62  ;;  %v1483_v2 = vor.u32 %v1482_v49, %v1478_v7 }
  0xa9   : > { %v684_v4 = vpop.permute.xlu1 %683  ;;  %505 = vrot.lane.b32.xlu0 %v490_v11, %s2500_s24  ;;  %v799_v47 = vsel %vm797_vm4, %v782_v25, %v3065_v8  ;;  %v1476_v11 = vsel %vm329_vm1, %v1471_v27, %v1475_v32  ;;  %v681_v53 = vrot.slane %v679_v50, 1  ;;  %v1485_v8 = vshll.u32 %v3174_v43, 16 }
  0xaa   : > { %v816_v54 = vsel %vm814_vm5, %v799_v47, %v684_v4  ;;  %v743_v1 = vsel %vm466_vm0, %v741_v46, %v742_v30  ;;  %v1548_v4 = vrot.slane %v3138_v48, 1 }
  0xab   : > { %1365 = vrot.lane.b32.xlu1 %v2099_v21, %s2499_s21  ;;  %v3163_v24 = vpop.permute.xlu0 %549  ;;  %v1570_v21 = vsel %vm763_vm2, %v2642_v33, %v1234_v20  ;;  %v2068_v33 = vld [vmem:[%s2604_s20 + $0x60] sm:$0xe]  ;;  %v677_v20 = vor.u32 %v676_v9, %v672_v52  ;;  %v1487_v48 = vrot.slane %v1485_v8, 1  ;;  %s185_s20 = sand.u32 1, %s2473_s13  }
  0xac   : > { %v1586_v3 = vsel %vm780_vm3, %v1570_v21, %v3112_v13  ;;  %v2116_v0 = vcombine.low %v2068_v33, %v3147_v39  ;;  %v767_v39 = vsel %vm763_vm2, %v2636_v26, %v3140_v51  ;;  %v1551_v26 = vrot.slane %v3174_v43, 1  ;;  %s3402_s4 = scalar_lea.sflag [#allocation3], %s185_s20 }
  0xad   : > { %v1490_v17 = vpop.permute.xlu1 %1489  ;;  %1311 = vrot.lane.b32.xlu0 %v1296_v15, %s2500_s24  ;;  %v1992_v15 = vcombine.low %v264_v60, %v3129_v31  ;;  %v682_v62 = vsel %vm329_vm1, %v677_v20, %v681_v53 }
  0xae   : > { %v1550_v32 = vrot.slane %v2116_v0, 1 }
  0xaf   : > { %695 = vrot.lane.b32.xlu1 %v670_v16, %s2502_s28  ;;  %v1356_v23 = vpop.permute.xlu0 %1355  ;;  %v1549_v16 = vsel %vm466_vm0, %v1547_v5, %v1548_v4  ;;  %v744_v52 = vrot.slane %v1992_v15, 1 }
  0xb0   : > { %v1552_v41 = vsel %vm466_vm0, %v1550_v32, %v1551_v26 }
  0xb1   : > { %v748_v56 = vpop.permute.xlu1 %747  ;;  %561 = vrot.lane.b32.xlu0 %v1976_v44, %s2499_s21  ;;  %v1602_v44 = vsel %vm797_vm4, %v1586_v3, %v3124_v34  ;;  %v1588_v34 = vsel %vm780_vm3, %v1572_v57, %v3099_v61  ;;  %v784_v61 = vsel %vm780_vm3, %v767_v39, %v3077_v22 }
  0xb2   : > { %v833_v29 = vsel %vm831_vm6, %v816_v54, %v748_v56  ;;  %v1618_v10 = vsel %vm814_vm5, %v1602_v44, %v1490_v17  ;;  %v1604_v27 = vsel %vm797_vm4, %v1588_v34, %v1356_v23  ;;  %v801_v9 = vsel %vm797_vm4, %v784_v61, %v3163_v24 }
  0xb3   : > { %1501 = vrot.lane.b32.xlu1 %v1476_v11, %s2502_s28  ;;  %2186 = vmatprep.mubr.msk.bf16.mxu0 %vm878_vm7, %v833_v29  ;;  %v686_v13 = vpop.permute.xlu0 %685  ;;  %v1488_v17 = vsel %vm329_vm1, %v1483_v2, %v1487_v48  ;;  %v746_v24 = vsel %vm466_vm0, %v744_v52, %v745_v59 }
  0xb4   : > { %v818_v50 = vsel %vm814_vm5, %v801_v9, %v686_v13 }
  0xb5   : > { %v1554_v40 = vpop.permute.xlu1 %1553  ;;  %1367 = vrot.lane.b32.xlu0 %v2100_v45, %s2499_s21  ;;  %s1911_s21 = sshll.u32 %s185_s20, 8 }
  0xb6   : > { %v1634_v18 = vsel %vm831_vm6, %v1618_v10, %v1554_v40  ;;  %s3325_s7 = scalar_lea.vmem [#allocation2], %s1911_s21  ;;  %s2504_s21 = smov [#allocation2]  }
  0xb7   : > { %759 = vrot.lane.b32.xlu1 %v743_v1, %s2503_s5  ;;  %2208 = vmatprep.mubr.msk.bf16.mxu1 %vm878_vm7, %v1634_v18  ;;  %v1492_v31 = vpop.permute.xlu0 %1491  ;;  %s1821_s16 = sshll.u32 %s3325_s7, 4  ;;  %s2409_s24 = sshll.u32 %s2504_s21, 4  ;;  %s3397_s16 = int_to_ptr.vmem [resolvable:$true] %s1821_s16  ;;  %s2410_s24 = int_to_ptr.vmem [resolvable:$false] %s2409_s24 }
  0xb8   : > { %v1620_v45 = vsel %vm814_vm5, %v1604_v27, %v1492_v31  ;;  %s2411_s6 = scalar_lea.vmem %s2410_s24, 8192  ;;  %p2412_p4 = scmp.lt.s32.totalorder %s3397_s16, %s2410_s24 }
  0xb9   : > { %v1556_v51 = vpop.permute.xlu1 %1555  ;;  %697 = vrot.lane.b32.xlu0 %v682_v62, %s2502_s28 }
  0xba   : > { %v1636_v25 = vsel %vm831_vm6, %v1620_v45, %v1556_v51 }
  0xbb   : > { %1565 = vrot.lane.b32.xlu1 %v1549_v16, %s2503_s5  ;;  %2209 = vmatmul.mubr.msk.bf16.vlgmr.msra.gmra.mxu1 %vm878_vm7, %v1636_v25  ;;  %v750_v22 = vpop.permute.xlu0 %749 }
  0xbc   : > { %v835_v21 = vsel %vm831_vm6, %v818_v50, %v750_v22 }
  0xbd   : > { %v1238_v43 = vpop.permute.xlu1 %1237  ;;  %1503 = vrot.lane.b32.xlu0 %v1488_v17, %s2502_s28  ;;  %2187 = vmatmul.mubr.msk.bf16.vlgmr.msra.gmra.mxu0 %vm878_vm7, %v835_v21 }
  0xbe   : > { %v1574_v13 = vsel %vm763_vm2, %v2741_v58, %v1238_v43 }
  0xbf   : > { %1567 = vrot.lane.b32.xlu1 %v1552_v41, %s2503_s5  ;;  %v431_v14 = vpop.permute.xlu0 %430 }
  0xc0   : > { %v769_v56 = vsel %vm763_vm2, %v2751_v6, %v431_v14 }
  0xc1   : > { %v496_v23 = vpop.permute.xlu1 %495  ;;  %761 = vrot.lane.b32.xlu0 %v746_v24, %s2503_s5  ;;  %s2405_s5 = scalar_lea.vmem %s3397_s16, 4096 }
  0xc2   : > { %v786_v49 = vsel %vm780_vm3, %v769_v56, %v496_v23  ;;  %p2406_p0 = scmp.ne.s32.totalorder %s3397_s16, %s2405_s5  ;;  %p2413_p5 = scmp.lt.s32.totalorder %s2411_s6, %s2405_s5 }
  0xc3   : > { %v433_v46 = vpop.permute.xlu0 %432 }
  0xc4   : > { %v771_v2 = vsel %vm763_vm2, %v2769_v12, %v433_v46  ;;  %p2407_p1 = pnand %p2406_p0, %p2577_p3  ;;  %p2414_p6 = por %p2413_p5, %p2412_p4 }
  0xc5   : > { %v1302_v30 = vpop.permute.xlu1 %1301 }
  0xc6   : > { %v1590_v44 = vsel %vm780_vm3, %v1574_v13, %v1302_v30  ;;  %p2408_p2 = pneg %p2407_p1 }
  0xc7   : > { %v1240_v47 = vpop.permute.xlu0 %1239 }
  0xc8   : > { %v1576_v5 = vsel %vm763_vm2, %v2790_v36, %v1240_v47  ;;  %p2415_p7 = pnand %p2414_p6, %p2408_p2 }
  0xc9   : > { %v552_v11 = vpop.permute.xlu1 %551 }
  0xca   : > { %v803_v29 = vsel %vm797_vm4, %v786_v49, %v552_v11 }
  0xcb   : > { %v498_v33 = vpop.permute.xlu0 %497 }
  0xcc   : > { %v788_v34 = vsel %vm780_vm3, %v771_v2, %v498_v33 }
  0xcd   : > { %v1358_v20 = vpop.permute.xlu1 %1357 }
  0xce   : > { %v1606_v6 = vsel %vm797_vm4, %v1590_v44, %v1358_v20 }
  0xcf   : > { %v1304_v7 = vpop.permute.xlu0 %1303 }
  0xd0   : > { %v1592_v15 = vsel %vm780_vm3, %v1576_v5, %v1304_v7 }
  0xd1   : > { %v688_v3 = vpop.permute.xlu1 %687 }
  0xd2   : > { %v820_v8 = vsel %vm814_vm5, %v803_v29, %v688_v3 }
  0xd3   : > { %v554_v54 = vpop.permute.xlu0 %553 }
  0xd4   : > { %v805_v18 = vsel %vm797_vm4, %v788_v34, %v554_v54 }
  0xd5   : > { %v1494_v53 = vpop.permute.xlu1 %1493 }
  0xd6   : > { %v1622_v4 = vsel %vm814_vm5, %v1606_v6, %v1494_v53 }
  0xd7   : > { %v1360_v60 = vpop.permute.xlu0 %1359 }
  0xd8   : > { %v1608_v58 = vsel %vm797_vm4, %v1592_v15, %v1360_v60 }
  0xd9   : > { %v752_v57 = vpop.permute.xlu1 %751 }
  0xda   : > { %v837_v0 = vsel %vm831_vm6, %v820_v8, %v752_v57 }
  0xdb   : > { %2190 = vmatprep.mubr.msk.bf16.mxu0 %vm878_vm7, %v837_v0  ;;  %v690_v1 = vpop.permute.xlu0 %689 }
  0xdc   : > { %v822_v27 = vsel %vm814_vm5, %v805_v18, %v690_v1 }
  0xdd   : > { %v1558_v10 = vpop.permute.xlu1 %1557 }
  0xde   : > { %v1638_v40 = vsel %vm831_vm6, %v1622_v4, %v1558_v10 }
  0xdf   : > { %2212 = vmatprep.mubr.msk.bf16.mxu1 %vm878_vm7, %v1638_v40  ;;  %v1496_v62 = vpop.permute.xlu0 %1495 }
  0xe0   : > { %v1624_v39 = vsel %vm814_vm5, %v1608_v58, %v1496_v62 }
  0xe1   : > { %v1560_v36 = vpop.permute.xlu1 %1559 }
  0xe2   : > { %v1640_v48 = vsel %vm831_vm6, %v1624_v39, %v1560_v36 }
  0xe3   : > { %2213 = vmatmul.mubr.msk.bf16.gmra.mxu1 %vm878_vm7, %v1640_v48  ;;  %v754_v31 = vpop.permute.xlu0 %753 }
  0xe4   : > { %v839_v45 = vsel %vm831_vm6, %v822_v27, %v754_v31 }
  0xe5   : > { %v1242_v16 = vpop.permute.xlu1 %1241  ;;  %2191 = vmatmul.mubr.msk.bf16.gmra.mxu0 %vm878_vm7, %v839_v45 }
  0xe6   : > { %v1578_v46 = vsel %vm763_vm2, %v2885_v63, %v1242_v16 }
  0xe7   : > { %v435_v12 = vpop.permute.xlu0 %434 }
  0xe8   : > { %v773_v22 = vsel %vm763_vm2, %v2890_v19, %v435_v12 }
  0xe9   : > { %v500_v32 = vpop.permute.xlu1 %499 }
  0xea   : > { %v790_v41 = vsel %vm780_vm3, %v773_v22, %v500_v32 }
  0xeb   : > { %v437_v26 = vpop.permute.xlu0 %436 }
  0xec   : > { %v775_v53 = vsel %vm763_vm2, %v2910_v37, %v437_v26 }
  0xed   : > { %v1306_v61 = vpop.permute.xlu1 %1305 }
  0xee   : > { %v1594_v47 = vsel %vm780_vm3, %v1578_v46, %v1306_v61 }
  0xef   : > { %v1244_v51 = vpop.permute.xlu0 %1243 }
  0xf0   : > { %v1580_v33 = vsel %vm763_vm2, %v2930_v55, %v1244_v51 }
  0xf1   : > { %v556_v52 = vpop.permute.xlu1 %555 }
  0xf2   : > { %v807_v24 = vsel %vm797_vm4, %v790_v41, %v556_v52 }
  0xf3   : > { %v502_v9 = vpop.permute.xlu0 %501 }
  0xf4   : > { %v792_v60 = vsel %vm780_vm3, %v775_v53, %v502_v9 }
  0xf5   : > { %v1362_v25 = vpop.permute.xlu1 %1361 }
  0xf6   : > { %v1610_v19 = vsel %vm797_vm4, %v1594_v47, %v1362_v25 }
  0xf7   : > { %v1308_v17 = vpop.permute.xlu0 %1307 }
  0xf8   : > { %v1596_v3 = vsel %vm780_vm3, %v1580_v33, %v1308_v17 }
  0xf9   : > { %v692_v59 = vpop.permute.xlu1 %691 }
  0xfa   : > { %v824_v14 = vsel %vm814_vm5, %v807_v24, %v692_v59 }
  0xfb   : > { %v558_v50 = vpop.permute.xlu0 %557 }
  0xfc   : > { %v809_v29 = vsel %vm797_vm4, %v792_v60, %v558_v50 }
  0xfd   : > { %v1498_v21 = vpop.permute.xlu1 %1497 }
  0xfe   : > { %v1626_v20 = vsel %vm814_vm5, %v1610_v19, %v1498_v21 }
  0xff   : > { %v1364_v43 = vpop.permute.xlu0 %1363 }
 0x100   : > { %v1612_v63 = vsel %vm797_vm4, %v1596_v3, %v1364_v43 }
 0x101   : > { %v756_v23 = vpop.permute.xlu1 %755 }
 0x102   : > { %v841_v30 = vsel %vm831_vm6, %v824_v14, %v756_v23 }
 0x103   : > { %2194 = vmatprep.mubr.msk.bf16.mxu0 %vm878_vm7, %v841_v30  ;;  %v694_v11 = vpop.permute.xlu0 %693 }
 0x104   : > { %v826_v57 = vsel %vm814_vm5, %v809_v29, %v694_v11 }
 0x105   : > { %v1562_v7 = vpop.permute.xlu1 %1561 }
 0x106   : > { %v1642_v54 = vsel %vm831_vm6, %v1626_v20, %v1562_v7 }
 0x107   : > { %2216 = vmatprep.mubr.msk.bf16.mxu1 %vm878_vm7, %v1642_v54  ;;  %v1500_v56 = vpop.permute.xlu0 %1499 }
 0x108   : > { %v1628_v49 = vsel %vm814_vm5, %v1612_v63, %v1500_v56 }
 0x109   : > { %v1564_v55 = vpop.permute.xlu1 %1563 }
 0x10a   : > { %v1644_v8 = vsel %vm831_vm6, %v1628_v49, %v1564_v55 }
 0x10b   : > { %2217 = vmatmul.mubr.msk.bf16.gmra.mxu1 %vm878_vm7, %v1644_v8  ;;  %v758_v13 = vpop.permute.xlu0 %757 }
 0x10c   : > { %v843_v0 = vsel %vm831_vm6, %v826_v57, %v758_v13 }
 0x10d   : > { %v1246_v44 = vpop.permute.xlu1 %1245  ;;  %2195 = vmatmul.mubr.msk.bf16.gmra.mxu0 %vm878_vm7, %v843_v0 }
 0x10e   : > { %v1582_v45 = vsel %vm763_vm2, %v3022_v38, %v1246_v44 }
 0x10f   : > { %v439_v37 = vpop.permute.xlu0 %438 }
 0x110   : > { %v777_v39 = vsel %vm763_vm2, %v3027_v35, %v439_v37 }
 0x111   : > { %v504_v1 = vpop.permute.xlu1 %503 }
 0x112   : > { %v794_v36 = vsel %vm780_vm3, %v777_v39, %v504_v1 }
 0x113   : > { %v441_v6 = vpop.permute.xlu0 %440 }
 0x114   : > { %v779_v17 = vsel %vm763_vm2, %v3048_v42, %v441_v6  ;;  %v3322_v42 = vld [vmem:[%s3456_s2] ss:$0 sm:$0xff] }
 0x115   : > { %v1310_v5 = vpop.permute.xlu1 %1309 }
 0x116   : > { %v1598_v12 = vsel %vm780_vm3, %v1582_v45, %v1310_v5 }
 0x117   : > { %v1248_v4 = vpop.permute.xlu0 %1247 }
 0x118   : > { %v1584_v26 = vsel %vm763_vm2, %v3071_v28, %v1248_v4 }
 0x119   : > { %v560_v10 = vpop.permute.xlu1 %559 }
 0x11a   : > { %v811_v48 = vsel %vm797_vm4, %v794_v36, %v560_v10 }
 0x11b   : > { %v506_v15 = vpop.permute.xlu0 %505 }
 0x11c   : > { %v796_v28 = vsel %vm780_vm3, %v779_v17, %v506_v15 }
 0x11d   : > { %v1366_v40 = vpop.permute.xlu1 %1365 }
 0x11e   : > { %v1614_v35 = vsel %vm797_vm4, %v1598_v12, %v1366_v40 }
 0x11f   : > { %v1312_v58 = vpop.permute.xlu0 %1311 }
 0x120   : > { %v1600_v52 = vsel %vm780_vm3, %v1584_v26, %v1312_v58 }
 0x121   : > { %v696_v62 = vpop.permute.xlu1 %695 }
 0x122   : > { %v828_v27 = vsel %vm814_vm5, %v811_v48, %v696_v62 }
 0x123   : > { %v562_v2 = vpop.permute.xlu0 %561 }
 0x124   : > { %v813_v22 = vsel %vm797_vm4, %v796_v28, %v562_v2 }
 0x125   : > { %v1502_v34 = vpop.permute.xlu1 %1501 }
 0x126   : > { %v1630_v61 = vsel %vm814_vm5, %v1614_v35, %v1502_v34 }
 0x127   : > { %v1368_v18 = vpop.permute.xlu0 %1367 }
 0x128   : > { %v1616_v9 = vsel %vm797_vm4, %v1600_v52, %v1368_v18 }
 0x129   : > { %v760_v31 = vpop.permute.xlu1 %759 }
 0x12a   : > { %v845_v16 = vsel %vm831_vm6, %v828_v27, %v760_v31 }
 0x12b   : > { %2198 = vmatprep.mubr.msk.bf16.mxu0 %vm878_vm7, %v845_v16  ;;  %v698_v32 = vpop.permute.xlu0 %697 }
 0x12c   : > { %v830_v41 = vsel %vm814_vm5, %v813_v22, %v698_v32 }
 0x12d   : > { %v1566_v51 = vpop.permute.xlu1 %1565 }
 0x12e   : > { %v1646_v38 = vsel %vm831_vm6, %v1630_v61, %v1566_v51 }
 0x12f   : > { %2220 = vmatprep.mubr.msk.bf16.mxu1 %vm878_vm7, %v1646_v38  ;;  %v1504_v25 = vpop.permute.xlu0 %1503 }
 0x130   : > { %v1632_v59 = vsel %vm814_vm5, %v1616_v9, %v1504_v25 }
 0x131   : > { %v1568_v50 = vpop.permute.xlu1 %1567 }
 0x132   : > { %v1648_v21 = vsel %vm831_vm6, %v1632_v59, %v1568_v50 }
 0x133   : > { %2221 = vmatmul.mubr.msk.bf16.gmra.mxu1 %vm878_vm7, %v1648_v21  ;;  %v762_v43 = vpop.permute.xlu0 %761 }
 0x134   : > { %v847_v24 = vsel %vm831_vm6, %v830_v41, %v762_v43 }
 0x135   : > { %2199 = vmatmul.mubr.msk.bf16.gmra.mxu0 %vm878_vm7, %v847_v24 }
 0x17b   : > { %v2210_v14 = vpop.f32.mrf.mxu1 }
 0x17c   : > { %v1733_v23 = vadd.f32 %v2210_v14, %v3322_v42 }
 0x17d   : > { %v1724_v46 = vpop.f32.mrf.mxu1  ;;  %v2188_v30 = vpop.f32.mrf.mxu0 }
 0x17e   : > { %2136 = vst [vmem:[%s3325_s7 + $0x30] sm:$0xff] %v1733_v23  ;;  %v1725_v47 = vadd.f32 %v3322_v42, %v1724_v46  ;;  %v938_v11 = vadd.f32 %v2188_v30, %v3322_v42 }
 0x17f   : > { %v2211_v19 = vpop.f32.mrf.mxu1  ;;  %v929_v33 = vpop.f32.mrf.mxu0 }
 0x180   : > { %2134 = vst [vmem:[%s3325_s7 + $0x10] sm:$0xff] %v1725_v47  ;;  %994 = vst [vmem:[%s3325_s7 + $0x20] sm:$0xff] %v938_v11  ;;  %v1736_v20 = vadd.f32 %v2211_v19, %v3322_v42  ;;  %v930_v7 = vadd.f32 %v3322_v42, %v929_v33 }
 0x181   : > { %v1727_v3 = vpop.f32.mrf.mxu1  ;;  %v2189_v54 = vpop.f32.mrf.mxu0 }
 0x182   : > { %2137 = vst [vmem:[%s3325_s7 + $0x38] sm:$0xff] %v1736_v20  ;;  %992 = vst [vmem:[%s3325_s7] sm:$0xff] %v930_v7  ;;  %v1728_v63 = vadd.f32 %v3322_v42, %v1727_v3  ;;  %v941_v56 = vadd.f32 %v2189_v54, %v3322_v42 }
 0x183   : > { %v932_v53 = vpop.f32.mrf.mxu0 }
 0x184   : > { %2135 = vst [vmem:[%s3325_s7 + $0x18] sm:$0xff] %v1728_v63  ;;  %995 = vst [vmem:[%s3325_s7 + $0x28] sm:$0xff] %v941_v56  ;;  %v933_v49 = vadd.f32 %v3322_v42, %v932_v53 }
 0x186   : > { %993 = vst [vmem:[%s3325_s7 + $0x8] sm:$0xff] %v933_v49 }
 0x1a3   : > { %v2214_v60 = vpop.f32.mrf.mxu1 }
 0x1a4   : > { %v1749_v55 = vadd.f32 %v2214_v60, %v3322_v42 }
 0x1a5   : > { %v1740_v29 = vpop.f32.mrf.mxu1  ;;  %v2192_v8 = vpop.f32.mrf.mxu0 }
 0x1a6   : > { %2140 = vst [vmem:[%s3325_s7 + $0x70] sm:$0xff] %v1749_v55  ;;  %v1741_v57 = vadd.f32 %v3322_v42, %v1740_v29  ;;  %v954_v13 = vadd.f32 %v2192_v8, %v3322_v42 }
 0x1a7   : > { %v2215_v0 = vpop.f32.mrf.mxu1  ;;  %v945_v44 = vpop.f32.mrf.mxu0 }
 0x1a8   : > { %2138 = vst [vmem:[%s3325_s7 + $0x50] sm:$0xff] %v1741_v57  ;;  %998 = vst [vmem:[%s3325_s7 + $0x60] sm:$0xff] %v954_v13  ;;  %v1752_v37 = vadd.f32 %v2215_v0, %v3322_v42  ;;  %v946_v1 = vadd.f32 %v3322_v42, %v945_v44 }
 0x1a9   : > { %v1743_v6 = vpop.f32.mrf.mxu1  ;;  %v2193_v5 = vpop.f32.mrf.mxu0 }
 0x1aa   : > { %2141 = vst [vmem:[%s3325_s7 + $0x78] sm:$0xff] %v1752_v37  ;;  %996 = vst [vmem:[%s3325_s7 + $0x40] sm:$0xff] %v946_v1  ;;  %v1744_v4 = vadd.f32 %v3322_v42, %v1743_v6  ;;  %v957_v10 = vadd.f32 %v2193_v5, %v3322_v42 }
 0x1ab   : > { %v948_v15 = vpop.f32.mrf.mxu0 }
 0x1ac   : > { %2139 = vst [vmem:[%s3325_s7 + $0x58] sm:$0xff] %v1744_v4  ;;  %999 = vst [vmem:[%s3325_s7 + $0x68] sm:$0xff] %v957_v10  ;;  %v949_v40 = vadd.f32 %v3322_v42, %v948_v15 }
 0x1ae   : > { %997 = vst [vmem:[%s3325_s7 + $0x48] sm:$0xff] %v949_v40 }
 0x1cb   : > { %v2218_v58 = vpop.f32.mrf.mxu1 }
 0x1cc   : > { %v1765_v62 = vadd.f32 %v2218_v58, %v3322_v42 }
 0x1cd   : > { %v1756_v2 = vpop.f32.mrf.mxu1  ;;  %v2196_v39 = vpop.f32.mrf.mxu0 }
 0x1ce   : > { %2144 = vst [vmem:[%s3325_s7 + $0xb0] sm:$0xff] %v1765_v62  ;;  %v1757_v34 = vadd.f32 %v3322_v42, %v1756_v2  ;;  %v970_v36 = vadd.f32 %v2196_v39, %v3322_v42 }
 0x1cf   : > { %v2219_v18 = vpop.f32.mrf.mxu1  ;;  %v961_v48 = vpop.f32.mrf.mxu0 }
 0x1d0   : > { %2142 = vst [vmem:[%s3325_s7 + $0x90] sm:$0xff] %v1757_v34  ;;  %1002 = vst [vmem:[%s3325_s7 + $0xa0] sm:$0xff] %v970_v36  ;;  %v1768_v27 = vadd.f32 %v2219_v18, %v3322_v42  ;;  %v962_v31 = vadd.f32 %v3322_v42, %v961_v48 }
 0x1d1   : > { %v1759_v45 = vpop.f32.mrf.mxu1  ;;  %v2197_v16 = vpop.f32.mrf.mxu0 }
 0x1d2   : > { %2145 = vst [vmem:[%s3325_s7 + $0xb8] sm:$0xff] %v1768_v27  ;;  %1000 = vst [vmem:[%s3325_s7 + $0x80] sm:$0xff] %v962_v31  ;;  %v1760_v12 = vadd.f32 %v3322_v42, %v1759_v45  ;;  %v973_v32 = vadd.f32 %v2197_v16, %v3322_v42 }
 0x1d3   : > { %v964_v35 = vpop.f32.mrf.mxu0 }
 0x1d4   : > { %2143 = vst [vmem:[%s3325_s7 + $0x98] sm:$0xff] %v1760_v12  ;;  %1003 = vst [vmem:[%s3325_s7 + $0xa8] sm:$0xff] %v973_v32  ;;  %v965_v26 = vadd.f32 %v3322_v42, %v964_v35 }
 0x1d6   : > { %1001 = vst [vmem:[%s3325_s7 + $0x88] sm:$0xff] %v965_v26 }
 0x1f3   : > { %v2222_v61 = vpop.f32.mrf.mxu1 }
 0x1f4   : > { %v1781_v51 = vadd.f32 %v2222_v61, %v3322_v42 }
 0x1f5   : > { %v1772_v52 = vpop.f32.mrf.mxu1  ;;  %v2200_v38 = vpop.f32.mrf.mxu0 }
 0x1f6   : > { %2148 = vst [vmem:[%s3325_s7 + $0xf0] sm:$0xff] %v1781_v51  ;;  %v1773_v9 = vadd.f32 %v3322_v42, %v1772_v52  ;;  %v986_v25 = vadd.f32 %v2200_v38, %v3322_v42 }
 0x1f7   : > { %v2223_v17 = vpop.f32.mrf.mxu1  ;;  %v977_v59 = vpop.f32.mrf.mxu0 }
 0x1f8   : > { %2146 = vst [vmem:[%s3325_s7 + $0xd0] sm:$0xff] %v1773_v9  ;;  %1006 = vst [vmem:[%s3325_s7 + $0xe0] sm:$0xff] %v986_v25  ;;  %v1784_v28 = vadd.f32 %v2223_v17, %v3322_v42  ;;  %v978_v50 = vadd.f32 %v3322_v42, %v977_v59 }
 0x1f9   : > { %v1775_v22 = vpop.f32.mrf.mxu1  ;;  %v2201_v21 = vpop.f32.mrf.mxu0 }
 0x1fa   : > { %2149 = vst [vmem:[%s3325_s7 + $0xf8] sm:$0xff] %v1784_v28  ;;  %1004 = vst [vmem:[%s3325_s7 + $0xc0] sm:$0xff] %v978_v50  ;;  %v1776_v41 = vadd.f32 %v3322_v42, %v1775_v22  ;;  %v989_v43 = vadd.f32 %v2201_v21, %v3322_v42 }
 0x1fb   : > { %v980_v24 = vpop.f32.mrf.mxu0 }
 0x1fc   : > { %2147 = vst [vmem:[%s3325_s7 + $0xd8] sm:$0xff] %v1776_v41  ;;  %1007 = vst [vmem:[%s3325_s7 + $0xe8] sm:$0xff] %v989_v43  ;;  %v981_v14 = vadd.f32 %v3322_v42, %v980_v24 }
 0x1fe   : > { %1005 = vst [vmem:[%s3325_s7 + $0xc8] sm:$0xff] %v981_v14 }
 0x1ff   : > { %2418 = shalt.err (!%p2415_p7)
}
 0x200   : > { %s2419_s20 = scalar_lea.hbm %s3392_s29, 4096  ;;  %s2423_s9 = scalar_lea.hbm %s3457_s3, 16384 }
 0x201   : > { %p2420_p9 = scmp.ne.s32.totalorder %s3392_s29, %s2419_s20  ;;  %p2424_p12 = scmp.lt.s32.totalorder %s3392_s29, %s3457_s3 }
 0x202   : > { %p2425_p13 = scmp.lt.s32.totalorder %s2423_s9, %s2419_s20 }
 0x203   : > { %p2421_p10 = pnand %p2420_p9, %p2577_p3 }
 0x204   : > { %p2426_p0 = por %p2425_p13, %p2424_p12 }
 0x205   : > { %p2422_p11 = pneg %p2421_p10 }
 0x207   : > { %p2427_p1 = pnand %p2426_p0, %p2422_p11 }
 0x209   : > { %2430 = shalt.err (!%p2427_p1)
}
 0x20a   : > { %s2505_s11 = smov 128  }
 0x20b   : > { %2226 = dma.vmem_to_hbm [thread:$0]  (%p2577_p3), %s3397_s16, 4096, %s3392_s29, %s3402_s4, %s2505_s11, %s2505_s11, %s2501_s27  }
 0x20c PF: > { %p2232_p2 = scmp.ge.s32.totalorder %s2497_s19, 2  ;;  %s1836_s28 = sand.u32 1, %s2469_s12  }
 0x20d   : > { %s1837_s5 = scalar_lea.sflag [#allocation3], %s1836_s28 }
 0x20e   : > { %p2229_p4 = pnand %p2232_p2, %p2586_p8 }
 0x210   : > { %p2230_p5 = pneg %p2229_p4 }
 0x212   : > { %2464 = dma.done.wait (%p2230_p5), %s1837_s5, 4096  }
 0x213   : > { %2466 = vsyncadd (%p2230_p5), %s1837_s5, 4294963200  ;;  %s16_s19 = sadd.s32 1, %s2497_s19   ;;  %s3460_s12 = smov %s2473_s13 }
 0x214   : > { %p13_p6 = scmp.ge.s32.totalorder %s16_s19, 6   ;;  %s3461_s13 = smov %s2477_s14 }
 0x215   : > { %s3462_s14 = smov %s2595_s30  ;;  %s3463_s15 = smov %s2489_s17 }
 0x216   : > { %s3464_s16 = smov %s2493_s18  ;;  %s3465_s17 = smov %s3468_s22 }
 0x217   : > { %s3466_s18 = smov %s3472_s23  ;;  %15 = sbr.rel (!%p13_p6) target bundleno = 5 (0x5), region = 71 }
 0x21c   :  { %1842 = vsyncpa [#allocation3], 1 }
 0x21d   :  { %1844 = vsyncpa [#allocation3 + $0x1], 1 }

</bundles_post_ra>
